<compile_context>
chip_gen: v5e
topology: v5e:2x2
jax: 0.10.0
libtpu: 0.0.40
codegen_flags: <defaults>
</compile_context>

<pallas_src>
import jax
import jax.numpy as jnp
from jax import lax
from jax.experimental import pallas as pl
from jax.experimental.pallas import tpu as pltpu


def _round_up(a, b):
    return (a + b - 1) // b * b


def _cdiv(a, b):
    return (a + b - 1) // b


# -------- Kernel 1: fused 3x3/s2 conv (in-kernel im2col) + folded BN + SiLU --------
def _make_conv_kernel(wrow, tp):
    def kernel(q_ref, qh_ref, w_ref, b_ref, y_ref):
        # q_ref : (1, 4, C1, TP)      lane-flattened parity quadrants of x_pad (bf16)
        # qh_ref: (1, 4, C1, 2*wrow)  halo = head of the next pixel tile (bf16)
        # w_ref : (C2, 9*C1)          conv weights with BN scale folded in (bf16)
        # b_ref : (C2, 1)             folded BN bias (f32)
        # y_ref : (1, C2, TP)         conv+BN+SiLU activation, flattened pixels (bf16)
        x_all = jnp.concatenate([q_ref[0], qh_ref[0]], axis=-1)   # (4, C1, TP + 2*wrow)
        taps = []
        for k in range(9):                        # static 3x3 taps
            kh, kw = k // 3, k % 3
            qi = (kh % 2) * 2 + (kw % 2)          # parity quadrant holding this tap
            off = (kh // 2) * wrow + (kw // 2)    # static lane offset inside the quadrant
            taps.append(x_all[qi, :, off:off + tp])                 # (C1, TP)
        cols = jnp.concatenate(taps, axis=0)                        # (9*C1, TP) VMEM im2col
        y = jnp.dot(w_ref[...], cols, preferred_element_type=jnp.float32)  # one MXU matmul
        y = y + b_ref[...]                                          # folded-BN bias
        y_ref[0] = (y * jax.nn.sigmoid(y)).astype(y_ref.dtype)      # SiLU, f32 math
    return kernel


# -------- Kernel 2: MaxPool2d(k=3, s=2, p=1) on activation parity quadrants --------
# Quadrants: Ypq[I, J] = ypad[2I+p, 2J+q]  (ypad = activation padded/masked with -inf);
# pooled[i, j] = max over the 9 statically shifted, unit-stride quadrant windows.
def _maxpool3x3s2_kernel(y00_ref, y01_ref, y10_ref, y11_ref, o_ref):
    hp, wp = o_ref.shape[2], o_ref.shape[3]

    def win(ref, di, dj):
        return ref[0, :, di:di + hp, dj:dj + wp]

    m = win(y00_ref, 0, 0)                                   # (di,dj)=(0,0)
    for term in (win(y01_ref, 0, 0),                         # (0,1)
                 win(y00_ref, 0, 1),                         # (0,2)
                 win(y10_ref, 0, 0),                         # (1,0)
                 win(y11_ref, 0, 0),                         # (1,1)
                 win(y10_ref, 0, 1),                         # (1,2)
                 win(y00_ref, 1, 0),                         # (2,0)
                 win(y01_ref, 1, 0),                         # (2,1)
                 win(y00_ref, 1, 1)):                        # (2,2)
        m = jnp.maximum(m, term)
    o_ref[0] = m.astype(o_ref.dtype)


@jax.jit
def conv_bn_silu_maxpool_forward(x, conv_w, bn_gamma, bn_beta, bn_mean, bn_var):
    """x: (N, C1, H, W) f32 NCHW; conv_w: (C2, C1, 3, 3)."""
    N, C1, H, W = x.shape
    C2 = conv_w.shape[0]
    assert conv_w.shape == (C2, C1, 3, 3), conv_w.shape
    eps = 1e-5

    Ho = (H - 1) // 2 + 1            # conv 3x3 / s2 / p1 output size
    Wo = (W - 1) // 2 + 1
    HP = (Ho - 1) // 2 + 1           # maxpool 3x3 / s2 / p1 output size
    WP = (Wo - 1) // 2 + 1
    K = 9 * C1

    # Lane-flattened layout: each conv-output row gets a 128-aligned pitch of `Wrow`
    # lanes (columns >= Wo are junk, masked before pooling).  The x_pad parity quadrants
    # use the SAME pitch, so conv tap (kh, kw) is the static lane offset
    # (kh//2)*Wrow + (kw//2) into quadrant (kh%2, kw%2).
    Wrow = _round_up(Wo + 2, 128)
    Hc_needed = max(2 * HP, Ho + 1)  # conv rows the pool needs (junk rows masked)

    # Conv rows per tile: even, VMEM-budgeted, and >=2 grid steps per image when N == 1.
    vmem_budget = 6 * 1024 * 1024
    per_row = Wrow * (48 * C1 + 12 * C2)          # rough per-conv-row VMEM bytes
    rpc = max(2, min((vmem_budget // per_row) // 2 * 2, _round_up(Hc_needed, 2)))
    if N == 1:
        rpc = max(2, min(rpc, _round_up(_cdiv(Hc_needed, 2), 2)))
    T = _cdiv(Hc_needed, rpc)
    Hc = T * rpc                     # conv rows actually computed (>= Hc_needed)
    TP = rpc * Wrow                  # flattened pixels per conv tile (lane-dense)
    HL = 2 * Wrow                    # halo block (next tile's head) for the shifted taps
    Lq = (Hc + 2) * Wrow             # flattened quadrant length

    # ---- parity quadrants of the zero-padded input: ONE fused pass over x, bf16 ----
    Hxp, Wxp = 2 * (Hc + 2), 2 * Wrow
    x_pad = jnp.pad(x, ((0, 0), (0, 0), (1, Hxp - H - 1), (1, Wxp - W - 1)))
    quads = [x_pad[:, :, p::2, q::2] for p in (0, 1) for q in (0, 1)]
    qflat = jnp.stack(quads, axis=1).astype(jnp.bfloat16).reshape(N, 4, C1, Lq)

    # ---- fold eval-mode BatchNorm into the conv weights ----
    # TODO(synk): train-mode BatchNorm2d (batch statistics) is not reproduced here.
    scale = bn_gamma / jnp.sqrt(bn_var + eps)
    w_mat = (jnp.transpose(conv_w, (0, 2, 3, 1)).reshape(C2, K)
             * scale[:, None]).astype(jnp.bfloat16)
    bias = (bn_beta - bn_mean * scale).reshape(C2, 1).astype(jnp.float32)

    cparams = pltpu.CompilerParams(dimension_semantics=("parallel", "parallel"),
                                   vmem_limit_bytes=32 * 1024 * 1024)

    y = pl.pallas_call(
        _make_conv_kernel(Wrow, TP),
        out_shape=jax.ShapeDtypeStruct((N, C2, Hc * Wrow), jnp.bfloat16),
        grid_spec=pltpu.PrefetchScalarGridSpec(
            num_scalar_prefetch=0,
            grid=(N, T),
            in_specs=[
                pl.BlockSpec((1, 4, C1, TP), lambda n, t: (n, 0, 0, t)),
                pl.BlockSpec((1, 4, C1, HL),
                             lambda n, t: (n, 0, 0, (t + 1) * (rpc // 2))),
                pl.BlockSpec((C2, K), lambda n, t: (0, 0)),
                pl.BlockSpec((C2, 1), lambda n, t: (0, 0)),
            ],
            out_specs=pl.BlockSpec((1, C2, TP), lambda n, t: (n, 0, t)),
        ),
        compiler_params=cparams,
    )(qflat, qflat, w_mat, bias)

    # ---- MaxPool2d(3, s=2, p=1): quadrant split of the bf16 activation (fused pass) ----
    y4 = y.reshape(N, C2, Hc, Wrow)                  # free reshape (row pitch = Wrow)
    rows_take = min(2 * HP + 1, Hc)
    cols_take = 2 * WP + 1
    ycrop = y4[:, :, :rows_take, :cols_take]
    neg = jnp.asarray(-jnp.inf, ycrop.dtype)
    valid = ((jnp.arange(rows_take)[:, None] < Ho)
             & (jnp.arange(cols_take)[None, :] < Wo))
    ycrop = jnp.where(valid[None, None], ycrop, neg)            # junk rows/cols -> -inf
    ypad = jnp.pad(ycrop, ((0, 0), (0, 0), (1, 2 * HP + 1 - rows_take), (1, 0)),
                   constant_values=-jnp.inf)                    # (N, C2, 2*HP+2, 2*WP+2)
    yq = [ypad[:, :, p::2, q::2] for p in (0, 1) for q in (0, 1)]   # 4 x (N,C2,HP+1,WP+1)

    # Channel block: VMEM-bounded, and >=2 grid blocks per image when N == 1 (v7x).
    per_ch = 40 * (HP + 1) * (WP + 1)
    max_c2b = max(1, vmem_budget // per_ch)
    if N == 1 and C2 > 1:
        max_c2b = min(max_c2b, C2 // 2)
    c2b = 1
    for d in range(1, C2 + 1):
        if C2 % d == 0 and d <= max_c2b:
            c2b = d

    quad_spec = pl.BlockSpec((1, c2b, HP + 1, WP + 1), lambda n, c: (n, c, 0, 0))
    out = pl.pallas_call(
        _maxpool3x3s2_kernel,
        out_shape=jax.ShapeDtypeStruct((N, C2, HP, WP), jnp.float32),
        grid_spec=pltpu.PrefetchScalarGridSpec(
            num_scalar_prefetch=0,
            grid=(N, C2 // c2b),
            in_specs=[quad_spec, quad_spec, quad_spec, quad_spec],
            out_specs=pl.BlockSpec((1, c2b, HP, WP), lambda n, c: (n, c, 0, 0)),
        ),
        compiler_params=cparams,
    )(*yq)
    return out


if __name__ == "__main__":
    key = jax.random.PRNGKey(0)
    k_x, k_w = jax.random.split(key)

    # conv_bn_relu_maxpool(c1=4, c2=8, act='silu')
    N, C1, H, W = 2, 4, 16, 16
    C2 = 8

    x = jax.random.normal(k_x, (N, C1, H, W), dtype=jnp.float32)

    fan_in = C1 * 3 * 3
    bound = 1.0 / (fan_in ** 0.5)
    conv_w = jax.random.uniform(k_w, (C2, C1, 3, 3), jnp.float32, -bound, bound)
    bn_gamma = jnp.ones((C2,), jnp.float32)
    bn_beta = jnp.zeros((C2,), jnp.float32)
    bn_mean = jnp.zeros((C2,), jnp.float32)    # eval-mode running stats
    bn_var = jnp.ones((C2,), jnp.float32)

    out = conv_bn_silu_maxpool_forward(x, conv_w, bn_gamma, bn_beta, bn_mean, bn_var)
    out = jax.block_until_ready(out)
    assert out.shape == (N, C2, H // 4, W // 4), out.shape

    # pure-JAX reference (conv -> folded BN -> SiLU -> maxpool), eval-mode BN
    conv = lax.conv_general_dilated(
        x, conv_w, window_strides=(2, 2), padding=((1, 1), (1, 1)),
        dimension_numbers=("NCHW", "OIHW", "NCHW"),
        precision=lax.Precision.HIGHEST)
    scale = bn_gamma / jnp.sqrt(bn_var + 1e-5)
    bn = conv * scale.reshape(1, -1, 1, 1) + (bn_beta - bn_mean * scale).reshape(1, -1, 1, 1)
    act = bn * jax.nn.sigmoid(bn)
    ref = lax.reduce_window(act, -jnp.inf, lax.max, (1, 1, 3, 3), (1, 1, 2, 2),
                            padding=((0, 0), (0, 0), (1, 1), (1, 1)))
    err = float(jnp.max(jnp.abs(out - ref)))
    assert err < 5e-2, f"max abs error {err}"

    print("KERNEL_OK")
</pallas_src>

<mosaic_0001>
module attributes {stable_mosaic.version = 11 : i64} {
  func.func @kernel(%arg0: i32, %arg1: i32, %arg2: memref<1x4x4x1280xbf16, #tpu.memory_space<vmem>>, %arg3: memref<1x4x4x256xbf16, #tpu.memory_space<vmem>>, %arg4: memref<8x36xbf16, #tpu.memory_space<vmem>>, %arg5: memref<8x1xf32, #tpu.memory_space<vmem>>, %arg6: memref<1x8x1280xbf16, #tpu.memory_space<vmem>>) attributes {dimension_semantics = [#tpu.dimension_semantics<parallel>, #tpu.dimension_semantics<parallel>], iteration_bounds = array<i64: 2, 1>, scalar_prefetch = 0 : i64, scratch_operands = 0 : i64, tpu.core_type = #tpu.core_type<tc>, window_params = [{transform_indices = @transform_0, window_bounds = array<i64: 1, 4, 4, 1280>}, {transform_indices = @transform_1, window_bounds = array<i64: 1, 4, 4, 256>}, {pipeline_mode = #tpu.pipeline_mode<synchronous>, transform_indices = @transform_2, window_bounds = array<i64: 8, 36>}, {pipeline_mode = #tpu.pipeline_mode<synchronous>, transform_indices = @transform_3, window_bounds = array<i64: 8, 1>}, {transform_indices = @transform_4, window_bounds = array<i64: 1, 8, 1280>}]} {
    %c0 = arith.constant 0 : index
    %c0_0 = arith.constant 0 : index
    %c0_1 = arith.constant 0 : index
    %c0_2 = arith.constant 0 : index
    %0 = vector.load %arg2[%c0, %c0_0, %c0_1, %c0_2] : memref<1x4x4x1280xbf16, #tpu.memory_space<vmem>>, vector<1x4x4x1280xbf16>
    %1 = vector.shape_cast %0 : vector<1x4x4x1280xbf16> to vector<4x4x1280xbf16>
    %c0_3 = arith.constant 0 : index
    %c0_4 = arith.constant 0 : index
    %c0_5 = arith.constant 0 : index
    %c0_6 = arith.constant 0 : index
    %2 = vector.load %arg3[%c0_3, %c0_4, %c0_5, %c0_6] : memref<1x4x4x256xbf16, #tpu.memory_space<vmem>>, vector<1x4x4x256xbf16>
    %3 = vector.shape_cast %2 : vector<1x4x4x256xbf16> to vector<4x4x256xbf16>
    %4 = tpu.concatenate %1, %3 in 2 : vector<4x4x1280xbf16>, vector<4x4x256xbf16> -> vector<4x4x1536xbf16>
    %5 = vector.extract_strided_slice %4 {offsets = [0, 0, 0], sizes = [1, 4, 1280], strides = [1, 1, 1]} : vector<4x4x1536xbf16> to vector<1x4x1280xbf16>
    %6 = vector.shape_cast %5 : vector<1x4x1280xbf16> to vector<4x1280xbf16>
    %7 = vector.extract_strided_slice %4 {offsets = [1, 0, 0], sizes = [1, 4, 1280], strides = [1, 1, 1]} : vector<4x4x1536xbf16> to vector<1x4x1280xbf16>
    %8 = vector.shape_cast %7 : vector<1x4x1280xbf16> to vector<4x1280xbf16>
    %9 = vector.extract_strided_slice %4 {offsets = [0, 0, 1], sizes = [1, 4, 1280], strides = [1, 1, 1]} : vector<4x4x1536xbf16> to vector<1x4x1280xbf16>
    %10 = vector.shape_cast %9 : vector<1x4x1280xbf16> to vector<4x1280xbf16>
    %11 = vector.extract_strided_slice %4 {offsets = [2, 0, 0], sizes = [1, 4, 1280], strides = [1, 1, 1]} : vector<4x4x1536xbf16> to vector<1x4x1280xbf16>
    %12 = vector.shape_cast %11 : vector<1x4x1280xbf16> to vector<4x1280xbf16>
    %13 = vector.extract_strided_slice %4 {offsets = [3, 0, 0], sizes = [1, 4, 1280], strides = [1, 1, 1]} : vector<4x4x1536xbf16> to vector<1x4x1280xbf16>
    %14 = vector.shape_cast %13 : vector<1x4x1280xbf16> to vector<4x1280xbf16>
    %15 = vector.extract_strided_slice %4 {offsets = [2, 0, 1], sizes = [1, 4, 1280], strides = [1, 1, 1]} : vector<4x4x1536xbf16> to vector<1x4x1280xbf16>
    %16 = vector.shape_cast %15 : vector<1x4x1280xbf16> to vector<4x1280xbf16>
    %17 = vector.extract_strided_slice %4 {offsets = [0, 0, 128], sizes = [1, 4, 1280], strides = [1, 1, 1]} : vector<4x4x1536xbf16> to vector<1x4x1280xbf16>
    %18 = vector.shape_cast %17 : vector<1x4x1280xbf16> to vector<4x1280xbf16>
    %19 = vector.extract_strided_slice %4 {offsets = [1, 0, 128], sizes = [1, 4, 1280], strides = [1, 1, 1]} : vector<4x4x1536xbf16> to vector<1x4x1280xbf16>
    %20 = vector.shape_cast %19 : vector<1x4x1280xbf16> to vector<4x1280xbf16>
    %21 = vector.extract_strided_slice %4 {offsets = [0, 0, 129], sizes = [1, 4, 1280], strides = [1, 1, 1]} : vector<4x4x1536xbf16> to vector<1x4x1280xbf16>
    %22 = vector.shape_cast %21 : vector<1x4x1280xbf16> to vector<4x1280xbf16>
    %23 = tpu.concatenate %6, %8, %10, %12, %14, %16, %18, %20, %22 in 0 : vector<4x1280xbf16>, vector<4x1280xbf16>, vector<4x1280xbf16>, vector<4x1280xbf16>, vector<4x1280xbf16>, vector<4x1280xbf16>, vector<4x1280xbf16>, vector<4x1280xbf16>, vector<4x1280xbf16> -> vector<36x1280xbf16>
    %c0_7 = arith.constant 0 : index
    %c0_8 = arith.constant 0 : index
    %24 = vector.load %arg4[%c0_7, %c0_8] : memref<8x36xbf16, #tpu.memory_space<vmem>>, vector<8x36xbf16>
    %cst = arith.constant dense<0.000000e+00> : vector<8x1280xf32>
    %25 = tpu.matmul %24, %23, %cst {dimension_numbers = #tpu.dot_dimension_numbers<[1], [0], [0], [1], [0, 0, 1, 1], [], []>} : vector<8x36xbf16>, vector<36x1280xbf16>, vector<8x1280xf32> -> vector<8x1280xf32>
    %c0_9 = arith.constant 0 : index
    %c0_10 = arith.constant 0 : index
    %26 = vector.load %arg5[%c0_9, %c0_10] : memref<8x1xf32, #tpu.memory_space<vmem>>, vector<8x1xf32>
    %27 = vector.broadcast %26 : vector<8x1xf32> to vector<8x1280xf32>
    %28 = arith.addf %25, %27 : vector<8x1280xf32>
    %29 = arith.negf %28 : vector<8x1280xf32>
    %30 = math.exp %29 : vector<8x1280xf32>
    %cst_11 = arith.constant 1.000000e+00 : f32
    %31 = vector.broadcast %cst_11 : f32 to vector<8x1280xf32>
    %32 = arith.addf %31, %30 : vector<8x1280xf32>
    %33 = arith.divf %31, %32 : vector<8x1280xf32>
    %34 = arith.mulf %28, %33 : vector<8x1280xf32>
    %35 = arith.truncf %34 : vector<8x1280xf32> to vector<8x1280xbf16>
    %c0_12 = arith.constant 0 : index
    %c0_13 = arith.constant 0 : index
    %c0_14 = arith.constant 0 : index
    %36 = vector.load %arg6[%c0_12, %c0_13, %c0_14] : memref<1x8x1280xbf16, #tpu.memory_space<vmem>>, vector<1x8x1280xbf16>
    %37 = vector.shape_cast %36 : vector<1x8x1280xbf16> to vector<8x1280xbf16>
    %38 = vector.shape_cast %35 : vector<8x1280xbf16> to vector<1x8x1280xbf16>
    tpu.vector_store %arg6[%c0_12, %c0_13, %c0_14], %38 {strides = array<i32>} : memref<1x8x1280xbf16, #tpu.memory_space<vmem>>, vector<1x8x1280xbf16>,
    return
  }
  func.func @transform_0(%arg0: i32, %arg1: i32) -> (i32, i32, i32, i32) {
    %c0_i32 = arith.constant 0 : i32
    %c0_i32_0 = arith.constant 0 : i32
    %c0_i32_1 = arith.constant 0 : i32
    return %arg0, %c0_i32, %c0_i32_0, %arg1 : i32, i32, i32, i32
  }
  func.func @transform_1(%arg0: i32, %arg1: i32) -> (i32, i32, i32, i32) {
    %c1_i32 = arith.constant 1 : i32
    %0 = arith.addi %arg1, %c1_i32 : i32
    %c5_i32 = arith.constant 5 : i32
    %1 = arith.muli %0, %c5_i32 : i32
    %c0_i32 = arith.constant 0 : i32
    %c0_i32_0 = arith.constant 0 : i32
    %c0_i32_1 = arith.constant 0 : i32
    return %arg0, %c0_i32, %c0_i32_0, %1 : i32, i32, i32, i32
  }
  func.func @transform_2(%arg0: i32, %arg1: i32) -> (i32, i32) {
    %c0_i32 = arith.constant 0 : i32
    %c0_i32_0 = arith.constant 0 : i32
    %c0_i32_1 = arith.constant 0 : i32
    return %c0_i32, %c0_i32_0 : i32, i32
  }
  func.func @transform_3(%arg0: i32, %arg1: i32) -> (i32, i32) {
    %c0_i32 = arith.constant 0 : i32
    %c0_i32_0 = arith.constant 0 : i32
    %c0_i32_1 = arith.constant 0 : i32
    return %c0_i32, %c0_i32_0 : i32, i32
  }
  func.func @transform_4(%arg0: i32, %arg1: i32) -> (i32, i32, i32) {
    %c0_i32 = arith.constant 0 : i32
    %c0_i32_0 = arith.constant 0 : i32
    return %arg0, %c0_i32, %arg1 : i32, i32, i32
  }
}

module attributes {stable_mosaic.version = 11 : i64} {
  func.func @_maxpool3x3s2_kernel(%arg0: i32, %arg1: i32, %arg2: memref<1x8x5x5xbf16, #tpu.memory_space<vmem>>, %arg3: memref<1x8x5x5xbf16, #tpu.memory_space<vmem>>, %arg4: memref<1x8x5x5xbf16, #tpu.memory_space<vmem>>, %arg5: memref<1x8x5x5xbf16, #tpu.memory_space<vmem>>, %arg6: memref<1x8x4x4xf32, #tpu.memory_space<vmem>>) attributes {dimension_semantics = [#tpu.dimension_semantics<parallel>, #tpu.dimension_semantics<parallel>], iteration_bounds = array<i64: 2, 1>, scalar_prefetch = 0 : i64, scratch_operands = 0 : i64, tpu.core_type = #tpu.core_type<tc>, window_params = [{transform_indices = @transform_0, window_bounds = array<i64: 1, 8, 5, 5>}, {transform_indices = @transform_1, window_bounds = array<i64: 1, 8, 5, 5>}, {transform_indices = @transform_2, window_bounds = array<i64: 1, 8, 5, 5>}, {transform_indices = @transform_3, window_bounds = array<i64: 1, 8, 5, 5>}, {transform_indices = @transform_4, window_bounds = array<i64: 1, 8, 4, 4>}]} {
    %c0 = arith.constant 0 : index
    %c0_0 = arith.constant 0 : index
    %c0_1 = arith.constant 0 : index
    %c0_2 = arith.constant 0 : index
    %0 = vector.load %arg2[%c0, %c0_0, %c0_1, %c0_2] : memref<1x8x5x5xbf16, #tpu.memory_space<vmem>>, vector<1x8x4x4xbf16>
    %1 = vector.shape_cast %0 : vector<1x8x4x4xbf16> to vector<8x4x4xbf16>
    %c0_3 = arith.constant 0 : index
    %c0_4 = arith.constant 0 : index
    %c0_5 = arith.constant 0 : index
    %c0_6 = arith.constant 0 : index
    %2 = vector.load %arg3[%c0_3, %c0_4, %c0_5, %c0_6] : memref<1x8x5x5xbf16, #tpu.memory_space<vmem>>, vector<1x8x4x4xbf16>
    %3 = vector.shape_cast %2 : vector<1x8x4x4xbf16> to vector<8x4x4xbf16>
    %c0_7 = arith.constant 0 : index
    %c0_8 = arith.constant 0 : index
    %c0_9 = arith.constant 0 : index
    %c1 = arith.constant 1 : index
    %4 = vector.load %arg2[%c0_7, %c0_8, %c0_9, %c1] : memref<1x8x5x5xbf16, #tpu.memory_space<vmem>>, vector<1x8x4x4xbf16>
    %5 = vector.shape_cast %4 : vector<1x8x4x4xbf16> to vector<8x4x4xbf16>
    %c0_10 = arith.constant 0 : index
    %c0_11 = arith.constant 0 : index
    %c0_12 = arith.constant 0 : index
    %c0_13 = arith.constant 0 : index
    %6 = vector.load %arg4[%c0_10, %c0_11, %c0_12, %c0_13] : memref<1x8x5x5xbf16, #tpu.memory_space<vmem>>, vector<1x8x4x4xbf16>
    %7 = vector.shape_cast %6 : vector<1x8x4x4xbf16> to vector<8x4x4xbf16>
    %c0_14 = arith.constant 0 : index
    %c0_15 = arith.constant 0 : index
    %c0_16 = arith.constant 0 : index
    %c0_17 = arith.constant 0 : index
    %8 = vector.load %arg5[%c0_14, %c0_15, %c0_16, %c0_17] : memref<1x8x5x5xbf16, #tpu.memory_space<vmem>>, vector<1x8x4x4xbf16>
    %9 = vector.shape_cast %8 : vector<1x8x4x4xbf16> to vector<8x4x4xbf16>
    %c0_18 = arith.constant 0 : index
    %c0_19 = arith.constant 0 : index
    %c0_20 = arith.constant 0 : index
    %c1_21 = arith.constant 1 : index
    %10 = vector.load %arg4[%c0_18, %c0_19, %c0_20, %c1_21] : memref<1x8x5x5xbf16, #tpu.memory_space<vmem>>, vector<1x8x4x4xbf16>
    %11 = vector.shape_cast %10 : vector<1x8x4x4xbf16> to vector<8x4x4xbf16>
    %c0_22 = arith.constant 0 : index
    %c0_23 = arith.constant 0 : index
    %c1_24 = arith.constant 1 : index
    %c0_25 = arith.constant 0 : index
    %12 = vector.load %arg2[%c0_22, %c0_23, %c1_24, %c0_25] : memref<1x8x5x5xbf16, #tpu.memory_space<vmem>>, vector<1x8x4x4xbf16>
    %13 = vector.shape_cast %12 : vector<1x8x4x4xbf16> to vector<8x4x4xbf16>
    %c0_26 = arith.constant 0 : index
    %c0_27 = arith.constant 0 : index
    %c1_28 = arith.constant 1 : index
    %c0_29 = arith.constant 0 : index
    %14 = vector.load %arg3[%c0_26, %c0_27, %c1_28, %c0_29] : memref<1x8x5x5xbf16, #tpu.memory_space<vmem>>, vector<1x8x4x4xbf16>
    %15 = vector.shape_cast %14 : vector<1x8x4x4xbf16> to vector<8x4x4xbf16>
    %c0_30 = arith.constant 0 : index
    %c0_31 = arith.constant 0 : index
    %c1_32 = arith.constant 1 : index
    %c1_33 = arith.constant 1 : index
    %16 = vector.load %arg2[%c0_30, %c0_31, %c1_32, %c1_33] : memref<1x8x5x5xbf16, #tpu.memory_space<vmem>>, vector<1x8x4x4xbf16>
    %17 = vector.shape_cast %16 : vector<1x8x4x4xbf16> to vector<8x4x4xbf16>
    %18 = arith.maximumf %1, %3 : vector<8x4x4xbf16>
    %19 = arith.maximumf %18, %5 : vector<8x4x4xbf16>
    %20 = arith.maximumf %19, %7 : vector<8x4x4xbf16>
    %21 = arith.maximumf %20, %9 : vector<8x4x4xbf16>
    %22 = arith.maximumf %21, %11 : vector<8x4x4xbf16>
    %23 = arith.maximumf %22, %13 : vector<8x4x4xbf16>
    %24 = arith.maximumf %23, %15 : vector<8x4x4xbf16>
    %25 = arith.maximumf %24, %17 : vector<8x4x4xbf16>
    %26 = arith.extf %25 : vector<8x4x4xbf16> to vector<8x4x4xf32>
    %c0_34 = arith.constant 0 : index
    %c0_35 = arith.constant 0 : index
    %c0_36 = arith.constant 0 : index
    %c0_37 = arith.constant 0 : index
    %27 = vector.load %arg6[%c0_34, %c0_35, %c0_36, %c0_37] : memref<1x8x4x4xf32, #tpu.memory_space<vmem>>, vector<1x8x4x4xf32>
    %28 = vector.shape_cast %27 : vector<1x8x4x4xf32> to vector<8x4x4xf32>
    %29 = vector.shape_cast %26 : vector<8x4x4xf32> to vector<1x8x4x4xf32>
    tpu.vector_store %arg6[%c0_34, %c0_35, %c0_36, %c0_37], %29 {strides = array<i32>} : memref<1x8x4x4xf32, #tpu.memory_space<vmem>>, vector<1x8x4x4xf32>,
    return
  }
  func.func @transform_0(%arg0: i32, %arg1: i32) -> (i32, i32, i32, i32) {
    %c0_i32 = arith.constant 0 : i32
    %c0_i32_0 = arith.constant 0 : i32
    %c0_i32_1 = arith.constant 0 : i32
    return %arg0, %arg1, %c0_i32, %c0_i32_0 : i32, i32, i32, i32
  }
  func.func @transform_1(%arg0: i32, %arg1: i32) -> (i32, i32, i32, i32) {
    %c0_i32 = arith.constant 0 : i32
    %c0_i32_0 = arith.constant 0 : i32
    %c0_i32_1 = arith.constant 0 : i32
    return %arg0, %arg1, %c0_i32, %c0_i32_0 : i32, i32, i32, i32
  }
  func.func @transform_2(%arg0: i32, %arg1: i32) -> (i32, i32, i32, i32) {
    %c0_i32 = arith.constant 0 : i32
    %c0_i32_0 = arith.constant 0 : i32
    %c0_i32_1 = arith.constant 0 : i32
    return %arg0, %arg1, %c0_i32, %c0_i32_0 : i32, i32, i32, i32
  }
  func.func @transform_3(%arg0: i32, %arg1: i32) -> (i32, i32, i32, i32) {
    %c0_i32 = arith.constant 0 : i32
    %c0_i32_0 = arith.constant 0 : i32
    %c0_i32_1 = arith.constant 0 : i32
    return %arg0, %arg1, %c0_i32, %c0_i32_0 : i32, i32, i32, i32
  }
  func.func @transform_4(%arg0: i32, %arg1: i32) -> (i32, i32, i32, i32) {
    %c0_i32 = arith.constant 0 : i32
    %c0_i32_0 = arith.constant 0 : i32
    %c0_i32_1 = arith.constant 0 : i32
    return %arg0, %arg1, %c0_i32, %c0_i32_0 : i32, i32, i32, i32
  }
}

</mosaic_0001>

<bundles_post_ra>
// kernel: conv_bn_silu_maxpool_forward.2
= control target key start
LH: loop header
LB: loop body
LE: loop exit
PB: predicated region body
PF: predicated region fallthrough
CT: control target
= control target key end

     0   :  { %s1884_s15 = smov 0   ;;  %s1886_s16 = smov 0   ;;  %s2524_s0 = inlined_call_operand.vmem [shape: bf16[2,4,4,1536], index: 0, kind: input, shape index: {}, may-alias: {0,1}]   ;;  %s2525_s1 = inlined_call_operand.vmem [shape: bf16[2,4,4,1536], index: 1, kind: input, shape index: {}, may-alias: {0,1}]   ;;  %s2526_s2 = inlined_call_operand.vmem [shape: bf16[8,36], index: 2, kind: input, shape index: {}]   ;;  %s2527_s3 = inlined_call_operand.vmem [shape: f32[8,1], index: 3, kind: input, shape index: {}]   ;;  %s2528_s4 = inlined_call_operand.vmem [shape: bf16[2,8,1280], index: 4, kind: output, shape index: {}]  }
   0x1   :  { %s1888_s17 = smov 0   ;;  %s1890_s18 = smov 0  }
   0x2   :  { %s1892_s19 = smov 0  }
   0x3 LB: > { %s26_s20 = sadd.s32 1, %s1835_s18  ;;  %p42_p1 = scmp.ne.s32.totalorder %s1827_s16, %s1823_s15  ;;  %s1839_s19 = sphi %s1892_s19, %s14_s19   ;;  %s1835_s18 = sphi %s1890_s18, %s2560_s18   ;;  %s1831_s17 = sphi %s1888_s17, %s2559_s17   ;;  %s1827_s16 = sphi %s1886_s16, %s2558_s16   ;;  %s1823_s15 = sphi %s1884_s15, %s2557_s15  }
   0x4   : > { %p28_p0 = scmp.ge.s32.totalorder %s26_s20, 2  ;;  %p43_p2 = scmp.eq.s32.totalorder %s1839_s19, 0 }
   0x5   : > { %s35_s23 = sadd.s32 1, %s1827_s16  ;;  %p1617_p5 = scmp.ge.s32.totalorder %s1839_s19, 2 }
   0x6   : > { %s2562_s20 = smov (%p28_p0, %s26_s20), 0  ;;  %p1915_p3 = por %p43_p2, %p42_p1 }
   0x7   : > { %s30_s22 = ssub.s32 %s1835_s18, %s2562_s20  ;;  %176 = sbr.rel (%p1617_p5) target bundleno = 36 (0x24), region = 24 }
   0x8   : > { %p33_p4 = scmp.eq.s32.totalorder %s30_s22, 0 }
   0xa   : > { %s1923_s24 = scalar_select %p33_p4, %s1827_s16, %s35_s23  }
   0xc   : > { %179 = sbr.rel (!%p1915_p3) target bundleno = 27 (0x1b), region = 28  ;;  %s181_s25 = sand.u32 (%p1915_p3), 1, %s1827_s16  }
   0xd   : > { %s1667_s26 = smul.u32 (%p1915_p3), 96, %s1835_s18  ;;  %s1943_s8 = smov (%p1915_p3), 0  }
   0xe   : > { %s1666_s27 = smul.u32 (%p1915_p3), 80, %s181_s25  ;;  %s1853_s9 = smov (%p1915_p3), 0  }
   0xf   : > { %s1933_s30 = scalar_lea.vmem (%p1915_p3), %s2524_s0, %s1667_s26  }
  0x10   : > { %s1935_s5 = scalar_lea.vmem (%p1915_p3), [#allocation2], %s1666_s27   ;;  %s2535_s7 = smov (%p1915_p3), %s1933_s30 }
  0x11   : > { %s2534_s6 = smov %s1935_s5 }
  0x12 LB: >> { %v447_v0 = vld [vmem:[%s1847_s7] sm:$0xff]  ;;  %v449_v1 = vld [vmem:[%s1847_s7 + $0x18] sm:$0xff]  ;;  %v451_v2 = vld [vmem:[%s1847_s7 + $0x30] sm:$0xff]  ;;  %s455_s10 = sadd.s32 1, %s1851_s8  ;;  %s441_s9 = sadd.s32 1, %s1855_s9   ;;  %s1855_s9 = sphi %s1853_s9, %s441_s9   ;;  %s1851_s8 = sphi %s1943_s8, %s2536_s8   ;;  %s1847_s7 = sphi %s2535_s7, %s460_s7   ;;  %s1843_s6 = sphi %s2534_s6, %s461_s6  }
  0x13   : >> { %448 = vst [vmem:[%s1843_s6] sm:$0xff] %v447_v0  ;;  %v453_v3 = vld [vmem:[%s1847_s7 + $0x48] sm:$0xff]  ;;  %p456_p6 = scmp.ge.s32.totalorder %s455_s10, 2  ;;  %p440_p7 = scmp.ge.s32.totalorder %s441_s9, 2 }
  0x14   : >> { %450 = vst [vmem:[%s1843_s6 + $0x14] sm:$0xff] %v449_v1  ;;  %v1627_v4 = vld [vmem:[%s1933_s30 + $0x10] sm:$0xf] (%p440_p7)  ;;  %v1629_v5 = vld [vmem:[%s1933_s30 + $0x28] sm:$0xf] (%p440_p7) }
  0x15   : >> { %452 = vst [vmem:[%s1843_s6 + $0x28] sm:$0xff] %v451_v2  ;;  %s2564_s10 = smov (%p456_p6, %s455_s10), 0  ;;  %443 = sbr.rel (!%p440_p7) target bundleno = 18 (0x12), region = 239  ;;  %v1631_v6 = vld [vmem:[%s1933_s30 + $0x40] sm:$0xf] (%p440_p7) }
  0x16   : >> { %454 = vst [vmem:[%s1843_s6 + $0x3c] sm:$0xff] %v453_v3  ;;  %s1625_s11 = sshll.u32 %s2564_s10, 3  ;;  %s2536_s8 = smov %s2564_s10  ;;  %v1633_v7 = vld [vmem:[%s1933_s30 + $0x58] sm:$0xf] (%p440_p7) }
  0x17   : >> { %s460_s7 = scalar_lea.vmem %s1933_s30, %s1625_s11   ;;  %s461_s6 = scalar_lea.vmem %s1935_s5, %s1625_s11 [#allocation2]   ;;  %1628 = vst [vmem:[%s1935_s5 + $0x10] sm:$0xf] (%p440_p7), %v1627_v4 }
  0x18   : > { %1630 = vst [vmem:[%s1935_s5 + $0x24] sm:$0xf] (%p440_p7), %v1629_v5 }
  0x19   : > { %1632 = vst [vmem:[%s1935_s5 + $0x38] sm:$0xf] (%p440_p7), %v1631_v6 }
  0x1a   : > { %1634 = vst [vmem:[%s1935_s5 + $0x4c] sm:$0xf] %v1633_v7 }
  0x1b PF: > { %483 = sbr.rel (!%p1915_p3) target bundleno = 36 (0x24), region = 94  ;;  %s485_s12 = sand.u32 (%p1915_p3), 1, %s1827_s16  }
  0x1c   : > { %s1636_s13 = smul.u32 (%p1915_p3), 96, %s1835_s18  ;;  %s1635_s14 = sshll.u32 (%p1915_p3), %s485_s12, 4 }
  0x1d   : > { %s487_s26 = scalar_lea.vmem (%p1915_p3), [#allocation3], %s1635_s14 }
  0x1e   : > { %s1485_s25 = scalar_lea.vmem (%p1915_p3), %s2525_s1, %s1636_s13 }
  0x1f   : > { %v1637_v8 = vld [vmem:[%s1485_s25 + $0x14] sm:$0xf] (%p1915_p3)  ;;  %v1638_v9 = vld [vmem:[%s1485_s25 + $0x2c] sm:$0xf] (%p1915_p3)  ;;  %v1639_v10 = vld [vmem:[%s1485_s25 + $0x44] sm:$0xf] (%p1915_p3) }
  0x20   : > { %512 = vst [vmem:[%s487_s26] sm:$0xf] %v1637_v8  ;;  %v1640_v11 = vld [vmem:[%s1485_s25 + $0x5c] sm:$0xf] }
  0x21   : > { %514 = vst [vmem:[%s487_s26 + $0x4] sm:$0xf] %v1638_v9 }
  0x22   : > { %516 = vst [vmem:[%s487_s26 + $0x8] sm:$0xf] %v1639_v10 }
  0x23   : > { %518 = vst [vmem:[%s487_s26 + $0xc] sm:$0xf] %v1640_v11 }
  0x24 PF: > { %p1641_p8 = scmp.ge.s32.totalorder %s1839_s19, 1  ;;  %p549_p9 = scmp.lt.s32.totalorder %s1839_s19, 3 }
  0x26   : > { %p550_p10 = pnand %p1641_p8, %p549_p9 }
  0x27   : > { %s556_s21 = sand.u32 (!%p550_p10), 1, %s1823_s15   ;;  %s1857_s29 = smov (!%p550_p10), 127  }
  0x28   : > { %553 = sbr.rel (%p550_p10) target bundleno = 421 (0x1a5), region = 135  ;;  %s1642_s30 = sshll.u32 (!%p550_p10), %s556_s21, 4 }
  0x29   : > { %s1668_s27 = smul.u32 (!%p550_p10), 80, %s556_s21  ;;  %s2089_s5 = scalar_lea.vmem (!%p550_p10), [#allocation3], %s1642_s30 }
  0x2a   : > { %p605_p11 = scmp.lt.s32.totalorder (!%p550_p10), %s1831_s17, 1 }
  0x2b   : > { %s1976_s28 = scalar_lea.vmem (!%p550_p10), [#allocation2], %s1668_s27 }
  0x2d   : > { %v615_v12 = vld [vmem:[%s1976_s28] sm:$0xff]  ;;  %v616_v13 = vld [vmem:[%s1976_s28 + $0x8] sm:$0xff]  ;;  %v617_v17 = vld [vmem:[%s1976_s28 + $0x10] sm:$0xf]  ;;  %vm786_vm0 = vcmask 1039360   ;;  %vm892_vm1 = vcmask 1041408  }
  0x2e   : > { %632 = vst [vmem:[#allocation1] ss:$4 sm:$0xff] %v615_v12  ;;  %v618_v20 = vld [vmem:[%s1976_s28 + $0x14] sm:$0xff]  ;;  %v619_v26 = vld [vmem:[%s1976_s28 + $0x1c] sm:$0xff]  ;;  %v620_v30 = vld [vmem:[%s1976_s28 + $0x24] sm:$0xf] }
  0x2f   : > { %635 = vst [vmem:[#allocation1 + $0x20] ss:$4 sm:$0xff] %v616_v13  ;;  %v621_v35 = vld [vmem:[%s1976_s28 + $0x28] sm:$0xff]  ;;  %v622_v36 = vld [vmem:[%s1976_s28 + $0x30] sm:$0xff]  ;;  %v623_v48 = vld [vmem:[%s1976_s28 + $0x38] sm:$0xf] }
  0x30   : > { %v625_v55 = vld [vmem:[%s1976_s28 + $0x44] sm:$0xff]  ;;  %v627_v62 = vld [vmem:[%s2089_s5] sm:$0xf]  ;;  %vm913_vm2 = vcmask 1043456   ;;  %vm934_vm3 = vcmask 1045504   ;;  %vm1042_vm4 = vcmask 293888  }
  0x31   : > { %v629_v5 = vld [vmem:[%s2089_s5 + $0x8] sm:$0xf]  ;;  %s2566_s17 = smov (!%p605_p11, %s1831_s17), 1 }
  0x32   : > { %s1669_s9 = smul.u32 40, %s2566_s17 }
  0x34   : > { %s2421_s17 = scalar_lea.vmem %s2528_s4, %s1669_s9 }
  0x35   : > { %v1980_v14 = vld.sshfl [vmem:[#allocation1 + $0x18] sm:$0xff pattern:$0x73625140]  ;;  %v1982_v15 = vld.sshfl [vmem:[#allocation1 + $0x8] sm:$0xff pattern:$0x73625140] }
  0x36   : > { %864 = vrot.lane.b32.xlu1 %v1980_v14, %s1857_s29  ;;  %860 = vrot.lane.b32.xlu0 %v1982_v15, %s1857_s29  ;;  %v1988_v16 = vld.sshfl [vmem:[#allocation1 + $0x10] sm:$0xff pattern:$0x73625140]  ;;  %v1992_v19 = vld.sshfl [vmem:[#allocation1 + $0x28] sm:$0xff pattern:$0x73625140] }
  0x37   : > { %v755_v18 = vrot.slane %v1988_v16, 4  ;;  %v1995_v21 = vld.sshfl [vmem:[#allocation1] sm:$0xff pattern:$0x73625140]  ;;  %v754_v24 = vrot.slane %v1982_v15, 4  ;;  %v756_v53 = vrot.slane %v1980_v14, 4 }
  0x38   : > { %v1997_v22 = vld.sshfl [vmem:[#allocation1 + $0x38] sm:$0xff pattern:$0x73625140]  ;;  %653 = vst [vmem:[#allocation1] ss:$4 sm:$0xff] %v617_v17  ;;  %v753_v29 = vrot.slane %v1995_v21, 4 }
  0x39   : > { %768 = vrot.lane.b32.xlu2 %v755_v18, %s1857_s29  ;;  %v2002_v23 = vld.sshfl [vmem:[#allocation1 + $0x30] sm:$0xff pattern:$0x73625140]  ;;  %v2005_v25 = vld.sshfl [vmem:[#allocation1 + $0x20] sm:$0xff pattern:$0x73625140] }
  0x3a   : > { %659 = vst [vmem:[#allocation1 + $0x20] ss:$4 sm:$0xff] %v618_v20  ;;  %v757_v54 = vrot.slane %v2005_v25, 4  ;;  %v758_v61 = vrot.slane %v1992_v19, 4  ;;  %v759_v8 = vrot.slane %v2002_v23, 4  ;;  %v2532_v12 = vrot.slane %v1997_v22, 4 }
  0x3e   : > { %862 = vrot.lane.b32.xlu0 %v1988_v16, %s1857_s29  ;;  %766 = vrot.lane.b32.xlu1 %v754_v24, %s1857_s29 }
  0x3f   : > { %v2013_v27 = vld.sshfl [vmem:[#allocation1] sm:$0xff pattern:$0x73625140]  ;;  %v2015_v28 = vld.sshfl [vmem:[#allocation1 + $0x8] sm:$0xff pattern:$0x73625140] }
  0x40   : > { %669 = vst [vmem:[#allocation1] ss:$4 sm:$0xff] %v619_v26  ;;  %v2531_v13 = vrot.slane %v2013_v27, 4  ;;  %v2530_v20 = vrot.slane %v2015_v28, 4 }
  0x41   : > { %872 = vrot.lane.b32.xlu2 %v1997_v22, %s1857_s29  ;;  %v2021_v31 = vld.sshfl [vmem:[#allocation1 + $0x20] sm:$0xff pattern:$0x73625140]  ;;  %v2023_v32 = vld.sshfl [vmem:[#allocation1 + $0x28] sm:$0xff pattern:$0x73625140] }
  0x42   : > { %v2025_v33 = vld.sshfl [vmem:[#allocation1 + $0x30] sm:$0xff pattern:$0x73625140]  ;;  %v2027_v34 = vld.sshfl [vmem:[#allocation1 + $0x38] sm:$0xff pattern:$0x73625140] }
  0x43   : > { %671 = vst [vmem:[#allocation1 + $0x20] ss:$4 sm:$0xff] %v620_v30  ;;  %v624_v30 = vld [vmem:[%s1976_s28 + $0x3c] sm:$0xff] }
  0x46   : > { %868 = vrot.lane.b32.xlu1 %v1992_v19, %s1857_s29  ;;  %764 = vrot.lane.b32.xlu0 %v753_v29, %s1857_s29 }
  0x47   : > { %v2034_v37 = vld.sshfl [vmem:[#allocation1] sm:$0xff pattern:$0x73625140]  ;;  %v2036_v38 = vld.sshfl [vmem:[#allocation1 + $0x8] sm:$0xff pattern:$0x73625140] }
  0x48   : > { %v2038_v39 = vld.sshfl [vmem:[#allocation1 + $0x10] sm:$0xff pattern:$0x73625140]  ;;  %v2040_v40 = vld.sshfl [vmem:[#allocation1 + $0x18] sm:$0xff pattern:$0x73625140] }
  0x49   : > { %685 = vst [vmem:[#allocation1] ss:$4 sm:$0xff] %v621_v35 }
  0x4a   : > { %v2042_v41 = vld.sshfl [vmem:[#allocation1 + $0x20] sm:$0xff pattern:$0x73625140]  ;;  %v2044_v42 = vld.sshfl [vmem:[#allocation1 + $0x28] sm:$0xff pattern:$0x73625140] }
  0x4b   : > { %687 = vst [vmem:[#allocation1 + $0x20] ss:$4 sm:$0xff] %v622_v36 }
  0x4e   : > { %870 = vrot.lane.b32.xlu1 %v2002_v23, %s1857_s29  ;;  %866 = vrot.lane.b32.xlu0 %v2005_v25, %s1857_s29 }
  0x50   : > { %v2050_v43 = vld.sshfl [vmem:[#allocation1 + $0x8] sm:$0xff pattern:$0x73625140]  ;;  %v2052_v44 = vld.sshfl [vmem:[#allocation1] sm:$0xff pattern:$0x73625140] }
  0x51   : > { %v808_v45 = vrot.slane %v2050_v43, 6  ;;  %v807_v46 = vrot.slane %v2052_v44, 6  ;;  %v2061_v50 = vld.sshfl [vmem:[#allocation1 + $0x10] sm:$0xff pattern:$0x73625140] }
  0x52   : > { %v2056_v47 = vld.sshfl [vmem:[#allocation1 + $0x20] sm:$0xff pattern:$0x73625140]  ;;  %v2063_v51 = vld.sshfl [vmem:[#allocation1 + $0x18] sm:$0xff pattern:$0x73625140] }
  0x53   : > { %820 = vrot.lane.b32.xlu2 %v808_v45, %s1857_s29  ;;  %v811_v49 = vrot.slane %v2056_v47, 6  ;;  %705 = vst [vmem:[#allocation1] ss:$4 sm:$0xff] %v623_v48  ;;  %v809_v52 = vrot.slane %v2061_v50, 6  ;;  %v810_v59 = vrot.slane %v2063_v51, 6 }
  0x54   : > { %v2084_v58 = vld.sshfl [vmem:[#allocation1 + $0x30] sm:$0xff pattern:$0x73625140]  ;;  %v2093_v63 = vld.sshfl [vmem:[#allocation1 + $0x28] sm:$0xff pattern:$0x73625140] }
  0x55   : > { %v813_v60 = vrot.slane %v2084_v58, 6  ;;  %v812_v4 = vrot.slane %v2093_v63, 6  ;;  %v2121_v10 = vld.sshfl [vmem:[#allocation1 + $0x38] sm:$0xff pattern:$0x73625140] }
  0x56   : > { %826 = vrot.lane.b32.xlu0 %v811_v49, %s1857_s29  ;;  %818 = vrot.lane.b32.xlu1 %v807_v46, %s1857_s29  ;;  %v814_v11 = vrot.slane %v2121_v10, 6  ;;  %711 = vst [vmem:[#allocation1 + $0x20] ss:$4 sm:$0xff] %v624_v30  ;;  %v626_v46 = vld [vmem:[%s1976_s28 + $0x4c] sm:$0xf]  ;;  %v851_v30 = vrot.slane %v2025_v33, 2 }
  0x5a   : > { %v2072_v56 = vld.sshfl [vmem:[#allocation1] sm:$0xff pattern:$0x73625140]  ;;  %v2074_v57 = vld.sshfl [vmem:[#allocation1 + $0x8] sm:$0xff pattern:$0x73625140] }
  0x5b   : > { %822 = vrot.lane.b32.xlu2 %v809_v52, %s1857_s29  ;;  %717 = vst [vmem:[#allocation1] ss:$4 sm:$0xff] %v625_v55  ;;  %v815_v9 = vrot.slane %v2072_v56, 6  ;;  %v816_v29 = vrot.slane %v2074_v57, 6 }
  0x5d   : > { %v713_v52 = vld.sshfl [vmem:[#allocation1 + $0x28] sm:$0xff pattern:$0x73625140]  ;;  %v714_v55 = vld.sshfl [vmem:[#allocation1 + $0x30] sm:$0xff pattern:$0x73625140] }
  0x5e   : > { %770 = vrot.lane.b32.xlu0 %v756_v53, %s1857_s29  ;;  %772 = vrot.lane.b32.xlu1 %v757_v54, %s1857_s29 }
  0x62   : > { %v2095_v0 = vld.sshfl [vmem:[#allocation1] sm:$0xff pattern:$0x73625140]  ;;  %v2097_v1 = vld.sshfl [vmem:[#allocation1 + $0x8] sm:$0xff pattern:$0x73625140] }
  0x63   : > { %824 = vrot.lane.b32.xlu2 %v810_v59, %s1857_s29  ;;  %v2103_v2 = vld.sshfl [vmem:[#allocation1 + $0x10] sm:$0xff pattern:$0x73625140]  ;;  %v2105_v3 = vld.sshfl [vmem:[#allocation1 + $0x18] sm:$0xff pattern:$0x73625140] }
  0x64   : > { %727 = vst [vmem:[#allocation1] ss:$4 sm:$0xff] %v627_v62  ;;  %v2154_v59 = vld.sshfl [vmem:[#allocation1 + $0x38] sm:$0xff pattern:$0x73625140] }
  0x66   : > { %830 = vrot.lane.b32.xlu0 %v813_v60, %s1857_s29  ;;  %774 = vrot.lane.b32.xlu1 %v758_v61, %s1857_s29  ;;  %v2156_v60 = vld.sshfl [vmem:[#allocation1 + $0x20] sm:$0xff pattern:$0x73625140] }
  0x67   : > { %719 = vst [vmem:[#allocation1 + $0x20] ss:$4 sm:$0xff] %v626_v46  ;;  %v1858_v46 = vmov 0  }
  0x68   : > { %1744 = vset.pattern.permute.xlu0 %v1858_v46 }
  0x6b   : > { %828 = vrot.lane.b32.xlu2 %v812_v4, %s1857_s29  ;;  %v2114_v6 = vld.sshfl [vmem:[#allocation1] sm:$0xff pattern:$0x73625140]  ;;  %v730_v7 = vld.sshfl [vmem:[#allocation1 + $0x8] sm:$0xff pattern:$0x73625140] }
  0x6c   : > { %738 = vst [vmem:[#allocation1] ss:$4 sm:$0xff] %v629_v5  ;;  %v2529_v35 = vrot.slane %v2114_v6, 4 }
  0x6e   : > { %874 = vrot.lane.b32.xlu0 %v2013_v27, %s1857_s29  ;;  %876 = vrot.lane.b32.xlu1 %v2015_v28, %s1857_s29 }
  0x73   : > { %776 = vrot.lane.b32.xlu2 %v759_v8, %s1857_s29  ;;  %v739_v17 = vld.sshfl [vmem:[#allocation1] sm:$0xff pattern:$0x73625140] }
  0x74   : > { %v817_v26 = vrot.slane %v739_v17, 6 }
  0x76   : > { %834 = vrot.lane.b32.xlu0 %v815_v9, %s1857_s29  ;;  %878 = vrot.lane.b32.xlu1 %v2114_v6, %s1857_s29 }
  0x7b   : > { %832 = vrot.lane.b32.xlu2 %v814_v11, %s1857_s29 }
  0x7e   : > { %778 = vrot.lane.b32.xlu0 %v2532_v12, %s1857_s29  ;;  %780 = vrot.lane.b32.xlu1 %v2531_v13, %s1857_s29 }
  0x83   : > { %880 = vrot.lane.b32.xlu2 %v730_v7, %s1857_s29 }
  0x86   : > { %782 = vrot.lane.b32.xlu1 %v2530_v20, %s1857_s29  ;;  %838 = vrot.lane.b32.xlu0 %v817_v26, %s1857_s29  ;;  %v744_v26 = vrot.slane %v2023_v32, 6 }
  0x8b   : > { %836 = vrot.lane.b32.xlu2 %v816_v29, %s1857_s29 }
  0x93   : > { %784 = vrot.lane.b32.xlu2 %v2529_v35, %s1857_s29  ;;  %v2149_v36 = vpop.permute.xlu2 %768  ;;  %v1036_v35 = vld [vmem:[%s2527_s3] sm:$0xff] }
  0x94   : > { %1039 = vperm.xlu0 %1744, %v1036_v35   ;;  %v798_v35 = vrot.slane %v2050_v43, 2  ;;  %v852_v43 = vrot.slane %v2027_v34, 2 }
  0x9b   : > { %v2151_v45 = vpop.permute.xlu2 %872 }
  0xa8   : > { %v865_v48 = vpop.permute.xlu1 %864  ;;  %v861_v49 = vpop.permute.xlu0 %860 }
  0xad   : > { %v821_v62 = vpop.permute.xlu2 %820 }
  0xb0   : > { %v863_v4 = vpop.permute.xlu0 %862  ;;  %v767_v5 = vpop.permute.xlu1 %766 }
  0xb1   : > { %v882_v7 = vsel %vm786_vm0, %v861_v49, %v863_v4  ;;  %v883_v9 = vsel %vm786_vm0, %v863_v4, %v865_v48  ;;  %v788_v4 = vsel %vm786_vm0, %v767_v5, %v2149_v36 }
  0xb2   : > { %v1047_v11 = vsel %vm892_vm1, %v882_v7, 0  ;;  %v1050_v17 = vsel %vm892_vm1, %v883_v9, 0 }
  0xb3   : > { %1081 = vmatpush.bf16.msra.mxu0 %v1047_v11  ;;  %1094 = vmatpush.bf16.msra.mxu1 %v1050_v17  ;;  %v896_v17 = vsel %vm892_vm1, %v1982_v15, %v744_v26  ;;  %v2184_v26 = vld [vmem:[%s2526_s2] sm:$0xf] }
  0xb4   : > { %v917_v13 = vsel %vm913_vm2, %v896_v17, %v788_v4 }
  0xb5   : > { %v823_v29 = vpop.permute.xlu2 %822 }
  0xb6   : > { %v841_v49 = vsel %vm786_vm0, %v821_v62, %v823_v29 }
  0xb7   : > { %v968_v7 = vsel %vm892_vm1, %v713_v52, %v841_v49  ;;  %v939_v52 = vsel %vm934_vm3, %v917_v13, %v798_v35 }
  0xb8   : > { %v869_v9 = vpop.permute.xlu1 %868  ;;  %v765_v11 = vpop.permute.xlu0 %764  ;;  %v988_v46 = vsel %vm913_vm2, %v968_v7, %v755_v18 }
  0xb9   : > { %v1009_v20 = vsel %vm934_vm3, %v988_v46, %v851_v30 }
  0xba   : > { %1095 = vmatpush.bf16.msra.mxu1 %v1009_v20 }
  0xbd   : > { %v825_v49 = vpop.permute.xlu2 %824 }
  0xbe   : > { %1096 = vmatpush.bf16.msra.mxu1 %v939_v52  ;;  %v842_v12 = vsel %vm786_vm0, %v823_v29, %v825_v49 }
  0xbf   : > { %v970_v30 = vsel %vm892_vm1, %v714_v55, %v842_v12  ;;  %v743_v55 = vrot.slane %v2021_v31, 6 }
  0xc0   : > { %v871_v18 = vpop.permute.xlu1 %870  ;;  %v867_v7 = vpop.permute.xlu0 %866  ;;  %v990_v29 = vsel %vm913_vm2, %v970_v30, %v756_v53  ;;  %v853_v30 = vrot.slane %v2034_v37, 2 }
  0xc1   : > { %v884_v20 = vsel %vm786_vm0, %v865_v48, %v867_v7  ;;  %v885_v13 = vsel %vm786_vm0, %v867_v7, %v869_v9  ;;  %v887_v4 = vsel %vm786_vm0, %v871_v18, %v2151_v45  ;;  %1645 = vmatmul.msk.bf16.vlgmr.msra.gmra.mxu1 %vm1042_vm4, %v2184_v26  ;;  %v1012_v12 = vsel %vm934_vm3, %v990_v29, %v852_v43 }
  0xc2   : > { %v1053_v17 = vsel %vm892_vm1, %v884_v20, 0  ;;  %v1056_v46 = vsel %vm892_vm1, %v885_v13, 0  ;;  %v1062_v35 = vsel %vm892_vm1, %v887_v4, 0  ;;  %v850_v7 = vrot.slane %v2023_v32, 2 }
  0xc3   : > { %1107 = vmatpush.bf16.msra.mxu2 %v1053_v17  ;;  %1120 = vmatpush.bf16.msra.mxu3 %v1056_v46  ;;  %v787_v4 = vsel %vm786_vm0, %v765_v11, %v767_v5  ;;  %v894_v31 = vsel %vm892_vm1, %v1995_v21, %v743_v55  ;;  %v746_v5 = vrot.slane %v2027_v34, 6  ;;  %v797_v21 = vrot.slane %v2052_v44, 2 }
  0xc4   : > { %1146 = vmatpush.bf16.msrb.mxu1 %v1062_v35  ;;  %v915_v15 = vsel %vm913_vm2, %v894_v31, %v787_v4  ;;  %v800_v46 = vrot.slane %v2063_v51, 2  ;;  %v2259_v4 = vld.sshfl [vmem:[#allocation1 + $0x28] sm:$0xff pattern:$0x73625140]  ;;  %v855_v31 = vrot.slane %v2038_v39, 2 }
  0xc5   : > { %v2201_v48 = vpop.permute.xlu2 %828  ;;  %v900_v44 = vsel %vm892_vm1, %v1980_v14, %v746_v5  ;;  %v936_v55 = vsel %vm934_vm3, %v915_v15, %v797_v21 }
  0xc7   : > { %1108 = vmatpush.bf16.msra.mxu2 %v1012_v12 }
  0xc8   : > { %v827_v53 = vpop.permute.xlu0 %826  ;;  %v819_v52 = vpop.permute.xlu1 %818 }
  0xc9   : > { %v843_v20 = vsel %vm786_vm0, %v825_v49, %v827_v53  ;;  %v840_v13 = vsel %vm786_vm0, %v819_v52, %v821_v62  ;;  %v745_v62 = vrot.slane %v2025_v33, 6  ;;  %v799_v33 = vrot.slane %v2061_v50, 2 }
  0xca   : > { %v972_v43 = vsel %vm892_vm1, %v2154_v59, %v843_v20  ;;  %v966_v29 = vsel %vm892_vm1, %v2156_v60, %v840_v13  ;;  %v844_v59 = vsel %vm786_vm0, %v827_v53, %v2201_v48  ;;  %v628_v53 = vld [vmem:[%s2089_s5 + $0x4] sm:$0xf]  ;;  %v724_v13 = vld.sshfl [vmem:[#allocation1 + $0x20] sm:$0xff pattern:$0x73625140] }
  0xcb   : > { %v986_v32 = vsel %vm913_vm2, %v966_v29, %v754_v24  ;;  %v992_v49 = vsel %vm913_vm2, %v972_v43, %v757_v54  ;;  %v886_v54 = vsel %vm786_vm0, %v869_v9, %v871_v18  ;;  %v974_v34 = vsel %vm892_vm1, %v2095_v0, %v844_v59  ;;  %734 = vst [vmem:[#allocation1 + $0x20] ss:$4 sm:$0xff] %v628_v53 }
  0xcc   : > { %v1006_v60 = vsel %vm934_vm3, %v986_v32, %v850_v7  ;;  %v1015_v11 = vsel %vm934_vm3, %v992_v49, %v853_v30  ;;  %v898_v17 = vsel %vm892_vm1, %v1988_v16, %v745_v62  ;;  %v1059_v0 = vsel %vm892_vm1, %v886_v54, 0 }
  0xcd   : > { %1082 = vmatpush.bf16.msra.mxu0 %v1006_v60  ;;  %1121 = vmatpush.bf16.msra.mxu3 %v1015_v11  ;;  %v2229_v24 = vpop.permute.xlu2 %776  ;;  %v854_v18 = vrot.slane %v2036_v38, 2  ;;  %v994_v14 = vsel %vm913_vm2, %v974_v34, %v758_v61  ;;  %v747_v7 = vrot.slane %v2034_v37, 6  ;;  %v748_v30 = vrot.slane %v2036_v38, 6  ;;  %v630_v60 = vld [vmem:[%s2089_s5 + $0xc] sm:$0xf] }
  0xce   : > { %v801_v37 = vrot.slane %v2056_v47, 2  ;;  %v802_v59 = vrot.slane %v2093_v63, 2 }
  0xcf   : > { %v1018_v20 = vsel %vm934_vm3, %v994_v14, %v854_v18  ;;  %v902_v43 = vsel %vm892_vm1, %v2005_v25, %v747_v7  ;;  %v904_v32 = vsel %vm892_vm1, %v1992_v19, %v748_v30  ;;  %v857_v18 = vrot.slane %v2042_v41, 2 }
  0xd0   : > { %v771_v35 = vpop.permute.xlu0 %770  ;;  %v773_v12 = vpop.permute.xlu1 %772 }
  0xd1   : > { %v789_v9 = vsel %vm786_vm0, %v2149_v36, %v771_v35  ;;  %v790_v50 = vsel %vm786_vm0, %v771_v35, %v773_v12  ;;  %1083 = vmatpush.bf16.msra.mxu0 %v936_v55  ;;  %v2537_v55 = vrot.slane %v1997_v22, 4 }
  0xd2   : > { %v919_v16 = vsel %vm913_vm2, %v898_v17, %v789_v9  ;;  %v921_v51 = vsel %vm913_vm2, %v900_v44, %v790_v50 }
  0xd3   : > { %v942_v52 = vsel %vm934_vm3, %v919_v16, %v799_v33  ;;  %v945_v36 = vsel %vm934_vm3, %v921_v51, %v800_v46  ;;  %v858_v16 = vrot.slane %v2044_v42, 2 }
  0xd4   : > { %1644 = vmatmul.msk.bf16.vlgmr.msra.gmra.mxu0 %vm1042_vm4, %v2184_v26  ;;  %1109 = vmatpush.bf16.msra.mxu2 %v942_v52 }
  0xd5   : > { %1133 = vmatpush.bf16.msrb.mxu0 %v1059_v0  ;;  %1122 = vmatpush.bf16.msra.mxu3 %v945_v36  ;;  %v833_v61 = vpop.permute.xlu2 %832 }
  0xd7   : > { %1646 = vmatmul.msk.bf16.vlgmr.msra.gmra.mxu2 %vm1042_vm4, %v2184_v26 }
  0xd8   : > { %1647 = vmatmul.msk.bf16.vlgmr.msra.gmra.mxu3 %vm1042_vm4, %v2184_v26  ;;  %v831_v38 = vpop.permute.xlu0 %830  ;;  %v775_v29 = vpop.permute.xlu1 %774 }
  0xd9   : > { %1134 = vmatpush.bf16.msrb.mxu0 %v1018_v20  ;;  %v845_v49 = vsel %vm786_vm0, %v2201_v48, %v831_v38  ;;  %v791_v62 = vsel %vm786_vm0, %v773_v12, %v775_v29  ;;  %v792_v47 = vsel %vm786_vm0, %v775_v29, %v2229_v24  ;;  %v846_v15 = vsel %vm786_vm0, %v831_v38, %v833_v61 }
  0xda   : > { %v976_v25 = vsel %vm892_vm1, %v2097_v1, %v845_v49  ;;  %v923_v5 = vsel %vm913_vm2, %v902_v43, %v791_v62  ;;  %v925_v48 = vsel %vm913_vm2, %v904_v32, %v792_v47  ;;  %v2288_v1 = vld.sshfl [vmem:[#allocation1 + $0x20] sm:$0xff pattern:$0x73625140]  ;;  %v978_v33 = vsel %vm892_vm1, %v2103_v2, %v846_v15 }
  0xdb   : > { %v948_v11 = vsel %vm934_vm3, %v923_v5, %v801_v37  ;;  %v996_v19 = vsel %vm913_vm2, %v976_v25, %v759_v8  ;;  %v951_v63 = vsel %vm934_vm3, %v925_v48, %v802_v59  ;;  %742 = vst [vmem:[#allocation1 + $0x20] ss:$4 sm:$0xff] %v630_v60  ;;  %v856_v12 = vrot.slane %v2040_v40, 2 }
  0xdc   : > { %v1021_v21 = vsel %vm934_vm3, %v996_v19, %v855_v31  ;;  %v998_v2 = vsel %vm913_vm2, %v978_v33, %v2537_v55  ;;  %v2538_v37 = vrot.slane %v2013_v27, 4  ;;  %v2539_v43 = vrot.slane %v2015_v28, 4 }
  0xdd   : > { %1135 = vmatpush.bf16.msrb.mxu0 %v948_v11  ;;  %1147 = vmatpush.bf16.msrb.mxu1 %v1021_v21  ;;  %v881_v54 = vpop.permute.xlu2 %880  ;;  %v749_v29 = vrot.slane %v2038_v39, 6  ;;  %v803_v32 = vrot.slane %v2084_v58, 2  ;;  %v804_v62 = vrot.slane %v2121_v10, 2  ;;  %v751_v10 = vrot.slane %v2042_v41, 6 }
  0xde   : > { %v859_v41 = vrot.slane %v2288_v1, 2  ;;  %v2540_v1 = vrot.slane %v2114_v6, 4 }
  0xdf   : > { %v906_v49 = vsel %vm892_vm1, %v2002_v23, %v749_v29  ;;  %v910_v19 = vsel %vm892_vm1, %v2013_v27, %v751_v10  ;;  %v806_v27 = vrot.slane %v2074_v57, 2 }
  0xe0   : > { %v875_v34 = vpop.permute.xlu0 %874  ;;  %v877_v17 = vpop.permute.xlu1 %876 }
  0xe1   : > { %1148 = vmatpush.bf16.msrb.mxu1 %v951_v63  ;;  %v888_v8 = vsel %vm786_vm0, %v2151_v45, %v875_v34  ;;  %v889_v46 = vsel %vm786_vm0, %v875_v34, %v877_v17  ;;  %v1024_v45 = vsel %vm934_vm3, %v998_v2, %v856_v12 }
  0xe2   : > { %v1065_v44 = vsel %vm892_vm1, %v888_v8, 0  ;;  %v1068_v35 = vsel %vm892_vm1, %v889_v46, 0 }
  0xe3   : > { %1159 = vmatpush.bf16.msrb.mxu2 %v1065_v44  ;;  %1172 = vmatpush.bf16.msrb.mxu3 %v1068_v35 }
  0xe4   : > { %1648 = vmatmul.msk.bf16.vlgmr.msrb.gmra.mxu0 %vm1042_vm4, %v2184_v26  ;;  %1649 = vmatmul.msk.bf16.vlgmr.msrb.gmra.mxu1 %vm1042_vm4, %v2184_v26 }
  0xe5   : > { %v837_v9 = vpop.permute.xlu2 %836 }
  0xe7   : > { %1160 = vmatpush.bf16.msrb.mxu2 %v1024_v45 }
  0xe8   : > { %v835_v50 = vpop.permute.xlu0 %834  ;;  %v879_v0 = vpop.permute.xlu1 %878 }
  0xe9   : > { %v847_v51 = vsel %vm786_vm0, %v833_v61, %v835_v50  ;;  %v848_v14 = vsel %vm786_vm0, %v835_v50, %v837_v9  ;;  %v890_v53 = vsel %vm786_vm0, %v877_v17, %v879_v0  ;;  %v891_v52 = vsel %vm786_vm0, %v879_v0, %v881_v54 }
  0xea   : > { %v980_v36 = vsel %vm892_vm1, %v2105_v3, %v847_v51  ;;  %v982_v7 = vsel %vm892_vm1, %v724_v13, %v848_v14  ;;  %v1071_v30 = vsel %vm892_vm1, %v890_v53, 0  ;;  %v1074_v20 = vsel %vm892_vm1, %v891_v52, 0 }
  0xeb   : > { %1185 = vmatpush.bf16.msra.mxu0 %v1071_v30  ;;  %v1000_v61 = vsel %vm913_vm2, %v980_v36, %v2538_v37  ;;  %v1002_v38 = vsel %vm913_vm2, %v982_v7, %v2539_v43  ;;  %1198 = vmatpush.bf16.msra.mxu1 %v1074_v20  ;;  %v750_v3 = vrot.slane %v2040_v40, 6 }
  0xec   : > { %v1027_v13 = vsel %vm934_vm3, %v1000_v61, %v857_v18  ;;  %v1030_v31 = vsel %vm934_vm3, %v1002_v38, %v858_v16 }
  0xed   : > { %1173 = vmatpush.bf16.msrb.mxu3 %v1027_v13  ;;  %v908_v47 = vsel %vm892_vm1, %v1997_v22, %v750_v3  ;;  %v752_v22 = vrot.slane %v2044_v42, 6  ;;  %v785_v11 = vpop.permute.xlu2 %784 }
  0xef   : > { %1186 = vmatpush.bf16.msra.mxu0 %v1030_v31  ;;  %v912_v15 = vsel %vm892_vm1, %v2015_v28, %v752_v22 }
  0xf0   : > { %v779_v25 = vpop.permute.xlu0 %778  ;;  %v781_v39 = vpop.permute.xlu1 %780 }
  0xf1   : > { %v793_v40 = vsel %vm786_vm0, %v2229_v24, %v779_v25  ;;  %v794_v5 = vsel %vm786_vm0, %v779_v25, %v781_v39  ;;  %v805_v24 = vrot.slane %v2072_v56, 2 }
  0xf2   : > { %v927_v59 = vsel %vm913_vm2, %v906_v49, %v793_v40  ;;  %v929_v60 = vsel %vm913_vm2, %v908_v47, %v794_v5 }
  0xf3   : > { %v954_v58 = vsel %vm934_vm3, %v927_v59, %v803_v32  ;;  %v957_v23 = vsel %vm934_vm3, %v929_v60, %v804_v62 }
  0xf4   : > { %1161 = vmatpush.bf16.msrb.mxu2 %v954_v58  ;;  %1174 = vmatpush.bf16.msrb.mxu3 %v957_v23 }
  0xf7   : > { %1650 = vmatmul.msk.bf16.vlgmr.msrb.gmra.mxu2 %vm1042_vm4, %v2184_v26  ;;  %1651 = vmatmul.msk.bf16.vlgmr.msrb.gmra.mxu3 %vm1042_vm4, %v2184_v26 }
  0xf8   : > { %v783_v48 = vpop.permute.xlu1 %782  ;;  %v839_v21 = vpop.permute.xlu0 %838 }
  0xf9   : > { %v795_v42 = vsel %vm786_vm0, %v781_v39, %v783_v48  ;;  %v849_v54 = vsel %vm786_vm0, %v837_v9, %v839_v21  ;;  %v796_v63 = vsel %vm786_vm0, %v783_v48, %v785_v11 }
  0xfa   : > { %v984_v33 = vsel %vm892_vm1, %v2259_v4, %v849_v54  ;;  %v931_v56 = vsel %vm913_vm2, %v910_v19, %v795_v42  ;;  %v933_v28 = vsel %vm913_vm2, %v912_v15, %v796_v63 }
  0xfb   : > { %v960_v34 = vsel %vm934_vm3, %v931_v56, %v805_v24  ;;  %v1004_v17 = vsel %vm913_vm2, %v984_v33, %v2540_v1  ;;  %v963_v46 = vsel %vm934_vm3, %v933_v28, %v806_v27 }
  0xfc   : > { %1187 = vmatpush.bf16.msra.mxu0 %v960_v34  ;;  %v1033_v8 = vsel %vm934_vm3, %v1004_v17, %v859_v41 }
  0xfd   : > { %1199 = vmatpush.bf16.msra.mxu1 %v1033_v8 }
  0xff   : > { %1652 = vmatmul.msk.bf16.vlgmr.msra.gmra.mxu0 %vm1042_vm4, %v2184_v26 }
 0x101   : > { %1200 = vmatpush.bf16.msra.mxu1 %v963_v46 }
 0x104   : > { %1653 = vmatmul.msk.bf16.vlgmr.msra.gmra.mxu1 %vm1042_vm4, %v2184_v26 }
 0x106   : > { %v2371_v57 = vpop.permute.xlu0 %1039 }
 0x13e   : > { %v1098_v6 = vpop.f32.mrf.mxu1 }
 0x13f   : > { %v2374_v4 = vadd.f32 %v1098_v6, %v2371_v57 }
 0x141   : > { %v1655_v44 = vmul.f32 -1.442695, %v2374_v4 }
 0x143   : > { %1745 = vpow2.f32 %v1655_v44 }
 0x146   : > { %v1100_v35 = vpop.f32.mrf.mxu1 }
 0x149   : > { %v1746_v12 = vpop.eup %1745 }
 0x14a   : > { %v1237_v55 = vadd.f32 1.0, %v1746_v12 }
 0x14c   : > { %1747 = vrcp.f32 %v1237_v55  ;;  %v1272_v43 = vand.u32 2147483648, %v1237_v55  ;;  %vm1266_vm5 = vweird.f32 %v1237_v55  ;;  %v1270_v47 = vand.u32 2147483647, %v1237_v55 }
 0x14e   : > { %v1273_v5 = vor.u32 1.1754944e-38, %v1272_v43  ;;  %vm1271_vm10 = vcmp.eq.f32.partialorder %v1270_v47, 8.507059e+37 }
 0x151   : > { %v1085_v2 = vpop.f32.mrf.mxu0 }
 0x152   : > { %v2378_v45 = vadd.f32 %v1085_v2, %v2371_v57  ;;  %v1748_v26 = vpop.eup %1747 }
 0x153   : > { %v1262_v50 = vmul.f32 %v1748_v26, %v1237_v55  ;;  %vm1267_vm6 = vweird.f32 %v1748_v26 }
 0x154   : > { %v1654_v9 = vmul.f32 -1.442695, %v2378_v45  ;;  %vm2398_vm7 = vmor %vm1266_vm5, %vm1267_vm6 }
 0x155   : > { %v1263_v36 = vsub.f32 1.0, %v1262_v50 }
 0x156   : > { %1749 = vpow2.f32 %v1654_v9 }
 0x157   : > { %v1264_v20 = vmul.f32 %v1748_v26, %v1263_v36 }
 0x159   : > { %v1087_v0 = vpop.f32.mrf.mxu0  ;;  %v1265_v62 = vadd.f32 %v1748_v26, %v1264_v20 }
 0x15a   : > { %v1111_v18 = vpop.f32.mrf.mxu2 }
 0x15b   : > { %v2382_v16 = vadd.f32 %v1111_v18, %v2371_v57  ;;  %v1124_v51 = vpop.f32.mrf.mxu3  ;;  %v1269_v11 = vsel %vm2398_vm7, %v1748_v26, %v1265_v62 }
 0x15c   : > { %v1750_v14 = vpop.eup %1749  ;;  %v2385_v53 = vadd.f32 %v1124_v51, %v2371_v57  ;;  %v1274_v42 = vsel %vm1271_vm10, %v1273_v5, %v1269_v11 }
 0x15d   : > { %v1236_v52 = vadd.f32 1.0, %v1750_v14  ;;  %v1656_v7 = vmul.f32 -1.442695, %v2382_v16  ;;  %v1397_v1 = vmul.f32 %v1274_v42, %v2374_v4 }
 0x15e   : > { %v1657_v30 = vmul.f32 -1.442695, %v2385_v53 }
 0x15f   : > { %1751 = vrcp.f32 %v1236_v52  ;;  %vm1251_vm8 = vweird.f32 %v1236_v52  ;;  %v1257_v60 = vand.u32 2147483648, %v1236_v52  ;;  %v1255_v10 = vand.u32 2147483647, %v1236_v52 }
 0x160   : > { %1753 = vpow2.f32 %v1656_v7 }
 0x161   : > { %1755 = vpow2.f32 %v1657_v30  ;;  %v1137_v37 = vpop.f32.mrf.mxu0  ;;  %v1150_v61 = vpop.f32.mrf.mxu1  ;;  %v1258_v21 = vor.u32 1.1754944e-38, %v1257_v60  ;;  %vm1256_vm12 = vcmp.eq.f32.partialorder %v1255_v10, 8.507059e+37 }
 0x162   : > { %v2390_v38 = vadd.f32 %v1137_v37, %v2371_v57  ;;  %v2393_v29 = vadd.f32 %v1150_v61, %v2371_v57  ;;  %v1113_v3 = vpop.f32.mrf.mxu2 }
 0x163   : > { %v1126_v13 = vpop.f32.mrf.mxu3 }
 0x164   : > { %v1658_v31 = vmul.f32 -1.442695, %v2390_v38  ;;  %v1659_v32 = vmul.f32 -1.442695, %v2393_v29 }
 0x165   : > { %v1752_v49 = vpop.eup %1751 }
 0x166   : > { %v1754_v25 = vpop.eup %1753  ;;  %v1247_v39 = vmul.f32 %v1752_v49, %v1236_v52  ;;  %1757 = vpow2.f32 %v1658_v31  ;;  %vm1252_vm9 = vweird.f32 %v1752_v49 }
 0x167   : > { %v1756_v59 = vpop.eup %1755  ;;  %v1238_v58 = vadd.f32 1.0, %v1754_v25  ;;  %1759 = vpow2.f32 %v1659_v32  ;;  %vm1253_vm11 = vmor %vm1251_vm8, %vm1252_vm9 }
 0x168   : > { %v1248_v23 = vsub.f32 1.0, %v1247_v39  ;;  %v1239_v22 = vadd.f32 1.0, %v1756_v59 }
 0x169   : > { %1761 = vrcp.f32 %v1238_v58  ;;  %v1139_v24 = vpop.f32.mrf.mxu0  ;;  %v1152_v19 = vpop.f32.mrf.mxu1  ;;  %v1285_v46 = vand.u32 2147483647, %v1238_v58  ;;  %v1287_v6 = vand.u32 2147483648, %v1238_v58  ;;  %vm1281_vm13 = vweird.f32 %v1238_v58 }
 0x16a   : > { %v1249_v48 = vmul.f32 %v1752_v49, %v1248_v23  ;;  %1763 = vrcp.f32 %v1239_v22  ;;  %v1300_v35 = vand.u32 2147483647, %v1239_v22  ;;  %v1302_v12 = vand.u32 2147483648, %v1239_v22 }
 0x16b   : > { %vm1296_vm15 = vweird.f32 %v1239_v22  ;;  %vm2425_vm1 = vcmp.eq.f32.partialorder %v1285_v46, 8.507059e+37  ;;  %v1288_v0 = vor.u32 1.1754944e-38, %v1287_v6 }
 0x16c   : > { %v1758_v41 = vpop.eup %1757  ;;  %v1250_v15 = vadd.f32 %v1752_v49, %v1249_v48  ;;  %vm2433_vm3 = vcmp.eq.f32.partialorder %v1300_v35, 8.507059e+37  ;;  %v1303_v14 = vor.u32 1.1754944e-38, %v1302_v12 }
 0x16d   : > { %v1760_v54 = vpop.eup %1759  ;;  %v2411_v63 = vadd.f32 1.0, %v1758_v41 }
 0x16e   : > { %v1254_v33 = vsel %vm1253_vm11, %v1752_v49, %v1250_v15  ;;  %v2413_v56 = vadd.f32 1.0, %v1760_v54 }
 0x16f   : > { %v1762_v27 = vpop.eup %1761  ;;  %v1259_v34 = vsel %vm1256_vm12, %v1258_v21, %v1254_v33  ;;  %1765 = vrcp.f32 %v2411_v63  ;;  %vm1311_vm5 = vweird.f32 %v2411_v63  ;;  %v1315_v30 = vand.u32 2147483647, %v2411_v63 }
 0x170   : > { %v1764_v17 = vpop.eup %1763  ;;  %v1396_v28 = vmul.f32 %v1259_v34, %v2378_v45  ;;  %v1277_v8 = vmul.f32 %v1762_v27, %v1238_v58  ;;  %1767 = vrcp.f32 %v2413_v56  ;;  %vm1282_vm14 = vweird.f32 %v1762_v27 }
 0x171   : > { %v1292_v44 = vmul.f32 %v1764_v17, %v1239_v22  ;;  %vm1297_vm0 = vweird.f32 %v1764_v17  ;;  %vm2429_vm2 = vmor %vm1281_vm13, %vm1282_vm14  ;;  %v1317_v61 = vand.u32 2147483648, %v2411_v63  ;;  %vm1326_vm6 = vweird.f32 %v2413_v56 }
 0x172   : > { %v1406_v4 = vpack.c.bf16 %v1397_v1, %v1396_v28  ;;  %v1278_v55 = vsub.f32 1.0, %v1277_v8  ;;  %vm2437_vm4 = vmor %vm1296_vm15, %vm1297_vm0  ;;  %v1332_v43 = vand.u32 2147483648, %v2413_v56  ;;  %v1330_v62 = vand.u32 2147483647, %v2413_v56 }
 0x173   : > { %v1293_v2 = vsub.f32 1.0, %v1292_v44  ;;  %v1318_v23 = vor.u32 1.1754944e-38, %v1317_v61  ;;  %vm1316_vm10 = vcmp.eq.f32.partialorder %v1315_v30, 8.507059e+37 }
 0x174   : > { %1411 = vst [vmem:[%s2421_s17] sm:$0xff] %v1406_v4  ;;  %v1279_v45 = vmul.f32 %v1762_v27, %v1278_v55  ;;  %v1333_v24 = vor.u32 1.1754944e-38, %v1332_v43  ;;  %vm1331_vm12 = vcmp.eq.f32.partialorder %v1330_v62, 8.507059e+37 }
 0x175   : > { %v1766_v26 = vpop.eup %1765  ;;  %v1294_v18 = vmul.f32 %v1764_v17, %v1293_v2 }
 0x176   : > { %v1280_v52 = vadd.f32 %v1762_v27, %v1279_v45  ;;  %v1307_v7 = vmul.f32 %v1766_v26, %v2411_v63  ;;  %v1768_v20 = vpop.eup %1767  ;;  %vm1312_vm7 = vweird.f32 %v1766_v26 }
 0x177   : > { %v1295_v37 = vadd.f32 %v1764_v17, %v1294_v18  ;;  %v1322_v31 = vmul.f32 %v1768_v20, %v2413_v56  ;;  %vm1327_vm8 = vweird.f32 %v1768_v20  ;;  %vm2461_vm9 = vmor %vm1311_vm5, %vm1312_vm7 }
 0x178   : > { %v1284_v3 = vsel %vm2429_vm2, %v1762_v27, %v1280_v52  ;;  %v1308_v13 = vsub.f32 1.0, %v1307_v7  ;;  %vm1328_vm11 = vmor %vm1326_vm6, %vm1327_vm8 }
 0x179   : > { %v1289_v32 = vsel %vm2425_vm1, %v1288_v0, %v1284_v3  ;;  %v1299_v49 = vsel %vm2437_vm4, %v1764_v17, %v1295_v37  ;;  %v1323_v40 = vsub.f32 1.0, %v1322_v31 }
 0x17a   : > { %v1398_v47 = vmul.f32 %v1289_v32, %v2382_v16  ;;  %v1304_v25 = vsel %vm2433_vm3, %v1303_v14, %v1299_v49  ;;  %v1309_v39 = vmul.f32 %v1766_v26, %v1308_v13  ;;  %v1163_v5 = vpop.f32.mrf.mxu2  ;;  %v1176_v59 = vpop.f32.mrf.mxu3 }
 0x17b   : > { %v1399_v60 = vmul.f32 %v1304_v25, %v2385_v53  ;;  %v2466_v10 = vadd.f32 %v1163_v5, %v2371_v57  ;;  %v2469_v16 = vadd.f32 %v1176_v59, %v2371_v57  ;;  %v1324_v11 = vmul.f32 %v1768_v20, %v1323_v40 }
 0x17c   : > { %v1310_v22 = vadd.f32 %v1766_v26, %v1309_v39  ;;  %v1189_v19 = vpop.f32.mrf.mxu0 }
 0x17d   : > { %v1407_v53 = vpack.c.bf16 %v1399_v60, %v1398_v47  ;;  %v1660_v48 = vmul.f32 -1.442695, %v2466_v10  ;;  %v1661_v21 = vmul.f32 -1.442695, %v2469_v16  ;;  %v2477_v41 = vadd.f32 %v1189_v19, %v2371_v57 }
 0x17e   : > { %v1314_v15 = vsel %vm2461_vm9, %v1766_v26, %v1310_v22  ;;  %v1325_v42 = vadd.f32 %v1768_v20, %v1324_v11 }
 0x17f   : > { %1412 = vst [vmem:[%s2421_s17 + $0x8] sm:$0xff] %v1407_v53  ;;  %v1319_v54 = vsel %vm1316_vm10, %v1318_v23, %v1314_v15  ;;  %1769 = vpow2.f32 %v1660_v48  ;;  %v1662_v63 = vmul.f32 -1.442695, %v2477_v41 }
 0x180   : > { %v1400_v33 = vmul.f32 %v1319_v54, %v2390_v38  ;;  %v1329_v56 = vsel %vm1328_vm11, %v1768_v20, %v1325_v42  ;;  %1771 = vpow2.f32 %v1661_v21 }
 0x181   : > { %v1334_v27 = vsel %vm1331_vm12, %v1333_v24, %v1329_v56  ;;  %1773 = vpow2.f32 %v1662_v63  ;;  %v1202_v34 = vpop.f32.mrf.mxu1 }
 0x182   : > { %v1401_v1 = vmul.f32 %v1334_v27, %v2393_v29  ;;  %v2486_v17 = vadd.f32 %v1202_v34, %v2371_v57  ;;  %v1165_v28 = vpop.f32.mrf.mxu2  ;;  %v1178_v8 = vpop.f32.mrf.mxu3 }
 0x184   : > { %v1408_v46 = vpack.c.bf16 %v1401_v1, %v1400_v33  ;;  %v1663_v6 = vmul.f32 -1.442695, %v2486_v17  ;;  %v1191_v44 = vpop.f32.mrf.mxu0 }
 0x185   : > { %v1770_v35 = vpop.eup %1769 }
 0x186   : > { %v1772_v12 = vpop.eup %1771  ;;  %1413 = vst [vmem:[%s2421_s17 + $0x10] sm:$0xff] %v1408_v46  ;;  %v1242_v38 = vadd.f32 1.0, %v1770_v35  ;;  %1775 = vpow2.f32 %v1663_v6 }
 0x187   : > { %v1774_v4 = vpop.eup %1773  ;;  %v1243_v55 = vadd.f32 1.0, %v1772_v12 }
 0x188   : > { %1777 = vrcp.f32 %v1242_v38  ;;  %v1244_v29 = vadd.f32 1.0, %v1774_v4  ;;  %v1345_v0 = vand.u32 2147483647, %v1242_v38  ;;  %v1347_v14 = vand.u32 2147483648, %v1242_v38 }
 0x189   : > { %1779 = vrcp.f32 %v1243_v55  ;;  %v1204_v2 = vpop.f32.mrf.mxu1  ;;  %v1360_v52 = vand.u32 2147483647, %v1243_v55  ;;  %v1362_v30 = vand.u32 2147483648, %v1243_v55  ;;  %vm1341_vm13 = vweird.f32 %v1242_v38 }
 0x18a   : > { %1781 = vrcp.f32 %v1244_v29  ;;  %vm2490_vm15 = vcmp.eq.f32.partialorder %v1345_v0, 8.507059e+37  ;;  %vm1356_vm0 = vweird.f32 %v1243_v55  ;;  %v1348_v31 = vor.u32 1.1754944e-38, %v1347_v14 }
 0x18b   : > { %vm2494_vm2 = vcmp.eq.f32.partialorder %v1360_v52, 8.507059e+37  ;;  %v1363_v47 = vor.u32 1.1754944e-38, %v1362_v30  ;;  %vm1371_vm4 = vweird.f32 %v1244_v29  ;;  %v1377_v5 = vand.u32 2147483648, %v1244_v29 }
 0x18c   : > { %v1776_v45 = vpop.eup %1775  ;;  %v1375_v58 = vand.u32 2147483647, %v1244_v29 }
 0x18d   : > { %v1245_v57 = vadd.f32 1.0, %v1776_v45  ;;  %v1378_v42 = vor.u32 1.1754944e-38, %v1377_v5 }
 0x18e   : > { %v1778_v9 = vpop.eup %1777  ;;  %vm1376_vm9 = vcmp.eq.f32.partialorder %v1375_v58, 8.507059e+37 }
 0x18f   : > { %v1780_v26 = vpop.eup %1779  ;;  %v1337_v50 = vmul.f32 %v1778_v9, %v1242_v38  ;;  %1783 = vrcp.f32 %v1245_v57  ;;  %vm1342_vm14 = vweird.f32 %v1778_v9  ;;  %v1392_v19 = vand.u32 2147483648, %v1245_v57 }
 0x190   : > { %v1352_v18 = vmul.f32 %v1780_v26, %v1243_v55  ;;  %v1782_v36 = vpop.eup %1781  ;;  %vm1357_vm1 = vweird.f32 %v1780_v26  ;;  %vm1343_vm3 = vmor %vm1341_vm13, %vm1342_vm14  ;;  %v1390_v21 = vand.u32 2147483647, %v1245_v57  ;;  %vm1386_vm10 = vweird.f32 %v1245_v57 }
 0x191   : > { %v1338_v51 = vsub.f32 1.0, %v1337_v50  ;;  %v1367_v37 = vmul.f32 %v1782_v36, %v1244_v29  ;;  %vm1358_vm5 = vmor %vm1356_vm0, %vm1357_vm1  ;;  %vm1372_vm6 = vweird.f32 %v1782_v36  ;;  %v1393_v33 = vor.u32 1.1754944e-38, %v1392_v19 }
 0x192   : > { %v1353_v7 = vsub.f32 1.0, %v1352_v18  ;;  %vm1373_vm7 = vmor %vm1371_vm4, %vm1372_vm6  ;;  %vm1391_vm12 = vcmp.eq.f32.partialorder %v1390_v21, 8.507059e+37 }
 0x193   : > { %v1339_v20 = vmul.f32 %v1778_v9, %v1338_v51  ;;  %v1368_v49 = vsub.f32 1.0, %v1367_v37 }
 0x194   : > { %v1354_v43 = vmul.f32 %v1780_v26, %v1353_v7 }
 0x195   : > { %v1784_v3 = vpop.eup %1783  ;;  %v1340_v13 = vadd.f32 %v1778_v9, %v1339_v20  ;;  %v1369_v40 = vmul.f32 %v1782_v36, %v1368_v49 }
 0x196   : > { %v1355_v62 = vadd.f32 %v1780_v26, %v1354_v43  ;;  %v1382_v25 = vmul.f32 %v1784_v3, %v1245_v57  ;;  %vm1387_vm8 = vweird.f32 %v1784_v3 }
 0x197   : > { %v1344_v39 = vsel %vm1343_vm3, %v1778_v9, %v1340_v13  ;;  %v1370_v24 = vadd.f32 %v1782_v36, %v1369_v40  ;;  %vm1388_vm11 = vmor %vm1386_vm10, %vm1387_vm8 }
 0x198   : > { %v1349_v59 = vsel %vm2490_vm15, %v1348_v31, %v1344_v39  ;;  %v1359_v60 = vsel %vm1358_vm5, %v1780_v26, %v1355_v62  ;;  %v1383_v23 = vsub.f32 1.0, %v1382_v25 }
 0x199   : > { %v1402_v22 = vmul.f32 %v1349_v59, %v2466_v10  ;;  %v1364_v11 = vsel %vm2494_vm2, %v1363_v47, %v1359_v60  ;;  %v1374_v15 = vsel %vm1373_vm7, %v1782_v36, %v1370_v24 }
 0x19a   : > { %v1403_v53 = vmul.f32 %v1364_v11, %v2469_v16  ;;  %v1384_v48 = vmul.f32 %v1784_v3, %v1383_v23  ;;  %v1379_v10 = vsel %vm1376_vm9, %v1378_v42, %v1374_v15 }
 0x19b   : > { %v1404_v16 = vmul.f32 %v1379_v10, %v2477_v41 }
 0x19c   : > { %v1409_v54 = vpack.c.bf16 %v1403_v53, %v1402_v22  ;;  %v1385_v63 = vadd.f32 %v1784_v3, %v1384_v48 }
 0x19e   : > { %1414 = vst [vmem:[%s2421_s17 + $0x18] sm:$0xff] %v1409_v54  ;;  %v1389_v56 = vsel %vm1388_vm11, %v1784_v3, %v1385_v63 }
 0x19f   : > { %v1394_v27 = vsel %vm1391_vm12, %v1393_v33, %v1389_v56 }
 0x1a0   : > { %v1405_v34 = vmul.f32 %v1394_v27, %v2486_v17 }
 0x1a2   : > { %v1410_v1 = vpack.c.bf16 %v1405_v34, %v1404_v16 }
 0x1a4   : > { %1415 = vst [vmem:[%s2421_s17 + $0x20] sm:$0xff] %v1410_v1 }
 0x1a5 PF: > { %s14_s19 = sadd.s32 1, %s1839_s19   ;;  %s2557_s15 = smov %s1827_s16 }
 0x1a6   : > { %p11_p12 = scmp.ge.s32.totalorder %s14_s19, 4   ;;  %s2558_s16 = smov %s1923_s24 }
 0x1a7   : > { %s2559_s17 = smov %s1835_s18  ;;  %s2560_s18 = smov %s2562_s20 }
 0x1a8   :  { %13 = sbr.rel (!%p11_p12) target bundleno = 3 (0x3), region = 250 }

// kernel: conv_bn_silu_maxpool_forward.3
= control target key start
LH: loop header
LB: loop body
LE: loop exit
PB: predicated region body
PF: predicated region fallthrough
CT: control target
= control target key end

     0   :  { %s1076_s15 = smov 0   ;;  %s1078_s16 = smov 0   ;;  %s1358_s0 = inlined_call_operand.vmem [shape: bf16[2,8,5,5], index: 0, kind: input, shape index: {}]   ;;  %s1359_s1 = inlined_call_operand.vmem [shape: bf16[2,8,5,5], index: 1, kind: input, shape index: {}]   ;;  %s1360_s2 = inlined_call_operand.vmem [shape: bf16[2,8,5,5], index: 2, kind: input, shape index: {}]   ;;  %s1361_s3 = inlined_call_operand.vmem [shape: bf16[2,8,5,5], index: 3, kind: input, shape index: {}]   ;;  %s1362_s4 = inlined_call_operand.vmem [shape: f32[2,8,4,4], index: 4, kind: output, shape index: {}]  }
   0x1   :  { %s1080_s17 = smov 0  }
   0x2 LB: > { %s26_s18 = sadd.s32 1, %s1044_s16  ;;  %p923_p0 = scmp.ge.s32.totalorder %s1048_s17, 1  ;;  %s1048_s17 = sphi %s1080_s17, %s14_s17   ;;  %s1044_s16 = sphi %s1078_s16, %s1364_s16   ;;  %s1040_s15 = sphi %s1076_s15, %s1363_s15  }
   0x3   : > { %p28_p1 = scmp.ge.s32.totalorder %s26_s18, 2  ;;  %p234_p2 = scmp.lt.s32.totalorder %s1048_s17, 3 }
   0x5   : > { %s1366_s18 = smov (%p28_p1, %s26_s18), 0  ;;  %p235_p3 = pnand %p923_p0, %p234_p2 }
   0x6   : > { %p296_p4 = scmp.lt.s32.totalorder (!%p235_p3), %s1040_s15, 1  ;;  %s1050_s29 = smov (!%p235_p3), 127  }
   0x7   : > { %238 = sbr.rel (%p235_p3) target bundleno = 171 (0xab), region = 36 }
   0xc   : > { %s1368_s15 = smov (!%p296_p4, %s1040_s15), 1  ;;  %vm769_vm0 = vcmask 27648  }
   0xd   : > { %s1094_s19 = sshll.u32 %s1368_s15, 5 }
   0xe   : > { %s1100_s22 = scalar_lea.vmem %s1358_s0, %s1094_s19  ;;  %s1106_s25 = scalar_lea.vmem %s1359_s1, %s1094_s19 }
   0xf   : > { %v349_v0 = vld [vmem:[%s1100_s22 + $0x10] sm:$0x3]  ;;  %v350_v1 = vld [vmem:[%s1100_s22 + $0x14] sm:$0x3]  ;;  %v345_v7 = vld [vmem:[%s1100_s22] sm:$0x3]  ;;  %s323_s28 = scalar_lea.vmem %s1360_s2, %s1094_s19  ;;  %s1242_s6 = scalar_lea.vmem %s1361_s3, %s1094_s19 }
  0x10   : > { %v357_v2 = vld [vmem:[%s1106_s25 + $0x10] sm:$0x3]  ;;  %v358_v3 = vld [vmem:[%s1106_s25 + $0x14] sm:$0x3]  ;;  %v397_v4 = vunpack.c.l.bf16 %v349_v0  ;;  %v398_v5 = vunpack.c.l.bf16 %v350_v1  ;;  %v346_v8 = vld [vmem:[%s1100_s22 + $0x4] sm:$0x3]  ;;  %v393_v12 = vunpack.c.l.bf16 %v345_v7  ;;  %s1322_s9 = scalar_lea.vmem %s1362_s4, %s1094_s19 }
  0x11   : > { %v405_v6 = vunpack.c.l.bf16 %v357_v2  ;;  %v406_v9 = vunpack.c.l.bf16 %v358_v3  ;;  %v353_v10 = vld [vmem:[%s1106_s25] sm:$0x3]  ;;  %v354_v11 = vld [vmem:[%s1106_s25 + $0x4] sm:$0x3]  ;;  %v394_v13 = vunpack.c.l.bf16 %v346_v8  ;;  %v1117_v14 = vld [vmem:[%s1100_s22 + $0x18] sm:$0x3] }
  0x12   : > { %v976_v15 = vpack.i.bf16 %v398_v5, %v397_v4  ;;  %v401_v17 = vunpack.c.l.bf16 %v353_v10  ;;  %v402_v18 = vunpack.c.l.bf16 %v354_v11  ;;  %v1122_v19 = vld [vmem:[%s1100_s22 + $0x1c] sm:$0x3]  ;;  %v1125_v20 = vld [vmem:[%s1100_s22 + $0x8] sm:$0x3]  ;;  %v1128_v21 = vld [vmem:[%s1100_s22 + $0xc] sm:$0x3]  ;;  %v399_v26 = vunpack.c.l.bf16 %v1117_v14 }
  0x13   : > { %v1119_v16 = vmax.f32 %v397_v4, %v405_v6  ;;  %v1130_v22 = vmax.f32 %v398_v5, %v406_v9  ;;  %v966_v23 = vpack.i.bf16 %v394_v13, %v393_v12  ;;  %v400_v27 = vunpack.c.l.bf16 %v1122_v19  ;;  %v1143_v28 = vld [vmem:[%s323_s28] sm:$0x3]  ;;  %v1145_v29 = vld [vmem:[%s323_s28 + $0x4] sm:$0x3]  ;;  %v1152_v34 = vld [vmem:[%s323_s28 + $0x8] sm:$0x3] }
  0x14   : > { %977 = vrot.lane.b32.xlu1 %v976_v15, %s1050_s29  ;;  %v1137_v24 = vmax.f32 %v394_v13, %v402_v18  ;;  %v1139_v25 = vmax.f32 %v393_v12, %v401_v17  ;;  %v395_v30 = vunpack.c.l.bf16 %v1125_v20  ;;  %v396_v31 = vunpack.c.l.bf16 %v1128_v21  ;;  %v1154_v35 = vld [vmem:[%s323_s28 + $0xc] sm:$0x3]  ;;  %v1168_v39 = vld [vmem:[%s323_s28 + $0x18] sm:$0x3]  ;;  %v1170_v40 = vld [vmem:[%s323_s28 + $0x1c] sm:$0x3] }
  0x15   : > { %967 = vrot.lane.b32.xlu0 %v966_v23, %s1050_s29  ;;  %v489_v32 = vunpack.c.l.bf16 %v1143_v28  ;;  %v490_v33 = vunpack.c.l.bf16 %v1145_v29  ;;  %v981_v36 = vpack.i.bf16 %v400_v27, %v399_v26  ;;  %v1172_v41 = vld [vmem:[%s323_s28 + $0x10] sm:$0x3]  ;;  %v1174_v42 = vld [vmem:[%s323_s28 + $0x14] sm:$0x3]  ;;  %v491_v43 = vunpack.c.l.bf16 %v1152_v34  ;;  %v377_v45 = vld [vmem:[%s1100_s22] sm:$0x7] }
  0x16   : > { %v971_v38 = vpack.i.bf16 %v396_v31, %v395_v30  ;;  %v492_v44 = vunpack.c.l.bf16 %v1154_v35  ;;  %v378_v46 = vld [vmem:[%s1100_s22 + $0x4] sm:$0x7]  ;;  %v495_v47 = vunpack.c.l.bf16 %v1168_v39  ;;  %v496_v48 = vunpack.c.l.bf16 %v1170_v40  ;;  %v381_v51 = vld [vmem:[%s1100_s22 + $0x10] sm:$0x7]  ;;  %v382_v52 = vld [vmem:[%s1100_s22 + $0x14] sm:$0x7] }
  0x17   : > { %v986_v37 = vpack.i.bf16 %v490_v33, %v489_v32  ;;  %v493_v49 = vunpack.c.l.bf16 %v1172_v41  ;;  %v494_v50 = vunpack.c.l.bf16 %v1174_v42  ;;  %v379_v53 = vld [vmem:[%s1100_s22 + $0x8] sm:$0x7]  ;;  %v380_v54 = vld [vmem:[%s1100_s22 + $0xc] sm:$0x7]  ;;  %v609_v56 = vunpack.c.l.bf16 %v377_v45  ;;  %v383_v2 = vld [vmem:[%s1100_s22 + $0x18] sm:$0x7] }
  0x18   : > { %v991_v55 = vpack.i.bf16 %v492_v44, %v491_v43  ;;  %v610_v57 = vunpack.c.l.bf16 %v378_v46  ;;  %v1001_v58 = vpack.i.bf16 %v496_v48, %v495_v47  ;;  %v613_v59 = vunpack.c.l.bf16 %v381_v51  ;;  %v384_v3 = vld [vmem:[%s1100_s22 + $0x1c] sm:$0x7]  ;;  %v359_v23 = vld [vmem:[%s1106_s25 + $0x18] sm:$0x3]  ;;  %v385_v45 = vld [vmem:[%s1106_s25] sm:$0x7] }
  0x19   : > { %987 = vrot.lane.b32.xlu2 %v986_v37, %s1050_s29  ;;  %v614_v60 = vunpack.c.l.bf16 %v382_v52  ;;  %v996_v61 = vpack.i.bf16 %v494_v50, %v493_v49  ;;  %v611_v62 = vunpack.c.l.bf16 %v379_v53  ;;  %v612_v63 = vunpack.c.l.bf16 %v380_v54  ;;  %v355_v37 = vld [vmem:[%s1106_s25 + $0x8] sm:$0x3]  ;;  %v386_v46 = vld [vmem:[%s1106_s25 + $0x4] sm:$0x7]  ;;  %v369_v51 = vld [vmem:[%s1242_s6] sm:$0x3] }
  0x1a   : > { %v1204_v0 = vrot.slane %v609_v56, 1  ;;  %v1206_v1 = vrot.slane %v610_v57, 1  ;;  %v1211_v4 = vrot.slane %v613_v59, 1  ;;  %v615_v9 = vunpack.c.l.bf16 %v383_v2  ;;  %v370_v52 = vld [vmem:[%s1242_s6 + $0x4] sm:$0x3] }
  0x1b   : > { %v1213_v5 = vrot.slane %v614_v60, 1  ;;  %v1216_v6 = vrot.slane %v611_v62, 1  ;;  %v1218_v7 = vrot.slane %v612_v63, 1  ;;  %v616_v10 = vunpack.c.l.bf16 %v384_v3  ;;  %v373_v57 = vld [vmem:[%s1242_s6 + $0x10] sm:$0x3] }
  0x1c   : > { %982 = vrot.lane.b32.xlu1 %v981_v36, %s1050_s29  ;;  %v1006_v8 = vpack.i.bf16 %v1206_v1, %v1204_v0  ;;  %v1227_v13 = vrot.slane %v615_v9, 1  ;;  %v360_v36 = vld [vmem:[%s1106_s25 + $0x1c] sm:$0x3]  ;;  %v407_v53 = vunpack.c.l.bf16 %v359_v23  ;;  %v665_v60 = vunpack.c.l.bf16 %v385_v45  ;;  %v1261_v9 = vld [vmem:[%s1242_s6 + $0x8] sm:$0x3] }
  0x1d   : > { %972 = vrot.lane.b32.xlu0 %v971_v38, %s1050_s29  ;;  %v1016_v11 = vpack.i.bf16 %v1213_v5, %v1211_v4  ;;  %v1011_v12 = vpack.i.bf16 %v1218_v7, %v1216_v6  ;;  %v1229_v15 = vrot.slane %v616_v10, 1  ;;  %v356_v38 = vld [vmem:[%s1106_s25 + $0xc] sm:$0x3]  ;;  %v408_v54 = vunpack.c.l.bf16 %v360_v36  ;;  %v387_v19 = vld [vmem:[%s1106_s25 + $0x8] sm:$0x7] }
  0x1e   : > { %v404_v56 = vunpack.c.l.bf16 %v356_v38  ;;  %v521_v62 = vunpack.c.l.bf16 %v369_v51  ;;  %v522_v63 = vunpack.c.l.bf16 %v370_v52  ;;  %v415_v3 = vmax.f32 %v399_v26, %v407_v53  ;;  %v1264_v10 = vld [vmem:[%s1242_s6 + $0xc] sm:$0x3]  ;;  %v1280_v21 = vld [vmem:[%s1242_s6 + $0x1c] sm:$0x3] }
  0x1f   : > { %v1021_v17 = vpack.i.bf16 %v1229_v15, %v1227_v13  ;;  %v681_v38 = vrot.slane %v665_v60, 1  ;;  %v523_v53 = vunpack.c.l.bf16 %v1261_v9  ;;  %v524_v20 = vunpack.c.l.bf16 %v1264_v10 }
  0x20   : > { %v412_v14 = vmax.f32 %v396_v31, %v404_v56  ;;  %v391_v56 = vld [vmem:[%s1106_s25 + $0x18] sm:$0x7]  ;;  %v528_v10 = vunpack.c.l.bf16 %v1280_v21 }
  0x21   : > { %992 = vrot.lane.b32.xlu2 %v991_v55, %s1050_s29  ;;  %v403_v55 = vunpack.c.l.bf16 %v355_v37 }
  0x23   : > { %v411_v37 = vmax.f32 %v395_v30, %v403_v55  ;;  %v1277_v30 = vld [vmem:[%s1242_s6 + $0x18] sm:$0x3] }
  0x24   : > { %1002 = vrot.lane.b32.xlu1 %v1001_v58, %s1050_s29  ;;  %v374_v58 = vld [vmem:[%s1242_s6 + $0x14] sm:$0x3] }
  0x25   : > { %997 = vrot.lane.b32.xlu0 %v996_v61, %s1050_s29  ;;  %v666_v61 = vunpack.c.l.bf16 %v386_v46  ;;  %v388_v46 = vld [vmem:[%s1106_s25 + $0xc] sm:$0x7] }
  0x27   : > { %v682_v45 = vrot.slane %v666_v61, 1  ;;  %v389_v61 = vld [vmem:[%s1106_s25 + $0x10] sm:$0x7] }
  0x29   : > { %1007 = vrot.lane.b32.xlu2 %v1006_v8, %s1050_s29  ;;  %v416_v8 = vmax.f32 %v400_v27, %v408_v54 }
  0x2c   : > { %1017 = vrot.lane.b32.xlu1 %v1016_v11, %s1050_s29  ;;  %v525_v11 = vunpack.c.l.bf16 %v373_v57  ;;  %v392_v57 = vld [vmem:[%s1106_s25 + $0x1c] sm:$0x7] }
  0x2d   : > { %1012 = vrot.lane.b32.xlu0 %v1011_v12, %s1050_s29  ;;  %v526_v12 = vunpack.c.l.bf16 %v374_v58 }
  0x31   : > { %1022 = vrot.lane.b32.xlu2 %v1021_v17, %s1050_s29 }
  0x73   : > { %v1236_v18 = vpop.permute.xlu2 %987 }
  0x74   : > { %v990_v31 = vunpack.i.h.bf16 %v1236_v18 }
  0x7b   : > { %v1254_v59 = vpop.permute.xlu2 %992 }
  0x86   : > { %v978_v2 = vpop.permute.xlu1 %977 }
  0x87   : > { %v980_v17 = vunpack.i.h.bf16 %v978_v2  ;;  %v979_v23 = vunpack.i.l.bf16 %v978_v2  ;;  %v968_v36 = vpop.permute.xlu0 %967  ;;  %v668_v2 = vunpack.c.l.bf16 %v388_v46 }
  0x88   : > { %v970_v26 = vunpack.i.h.bf16 %v968_v36  ;;  %v969_v27 = vunpack.i.l.bf16 %v968_v36 }
  0x89   : > { %v470_v51 = vmax.f32 %v1130_v22, %v980_v17  ;;  %v469_v52 = vmax.f32 %v1119_v16, %v979_v23  ;;  %v667_v22 = vunpack.c.l.bf16 %v387_v19  ;;  %v989_v16 = vunpack.i.l.bf16 %v1236_v18  ;;  %v390_v17 = vld [vmem:[%s1106_s25 + $0x14] sm:$0x7]  ;;  %v1008_v19 = vpop.permute.xlu2 %1007 }
  0x8a   : > { %v466_v54 = vmax.f32 %v1137_v24, %v970_v26  ;;  %v465_v55 = vmax.f32 %v1139_v25, %v969_v27  ;;  %v527_v25 = vunpack.c.l.bf16 %v1277_v30  ;;  %v672_v23 = vunpack.c.l.bf16 %v392_v57 }
  0x8b   : > { %v502_v58 = vmax.f32 %v470_v51, %v494_v50  ;;  %v501_v60 = vmax.f32 %v469_v52, %v493_v49  ;;  %v671_v50 = vunpack.c.l.bf16 %v391_v56  ;;  %v669_v26 = vunpack.c.l.bf16 %v389_v61 }
  0x8c   : > { %v498_v9 = vmax.f32 %v466_v54, %v490_v33  ;;  %v497_v24 = vmax.f32 %v465_v55, %v489_v32  ;;  %v1302_v29 = vrot.slane %v667_v22, 1  ;;  %v670_v27 = vunpack.c.l.bf16 %v390_v17 }
  0x8d   : > { %v1300_v18 = vmax.f32 %v501_v60, %v525_v11  ;;  %v534_v42 = vmax.f32 %v502_v58, %v526_v12  ;;  %v1304_v46 = vrot.slane %v668_v2, 1  ;;  %v995_v22 = vunpack.i.h.bf16 %v1254_v59 }
  0x8e   : > { %v530_v41 = vmax.f32 %v498_v9, %v522_v63  ;;  %v529_v49 = vmax.f32 %v497_v24, %v521_v62  ;;  %v983_v36 = vpop.permute.xlu1 %982  ;;  %v1010_v63 = vunpack.i.h.bf16 %v1008_v19  ;;  %v1009_v62 = vunpack.i.l.bf16 %v1008_v19 }
  0x8f   : > { %v985_v33 = vunpack.i.h.bf16 %v983_v36  ;;  %v984_v28 = vunpack.i.l.bf16 %v983_v36  ;;  %v973_v32 = vpop.permute.xlu0 %972  ;;  %v994_v58 = vunpack.i.l.bf16 %v1254_v59  ;;  %v686_v61 = vrot.slane %v670_v27, 1 }
  0x90   : > { %v975_v51 = vunpack.i.h.bf16 %v973_v32  ;;  %v974_v52 = vunpack.i.l.bf16 %v973_v32  ;;  %v585_v11 = vmax.f32 %v529_v49, %v989_v16  ;;  %v586_v30 = vmax.f32 %v530_v41, %v990_v31 }
  0x91   : > { %v472_v12 = vmax.f32 %v416_v8, %v985_v33  ;;  %v471_v21 = vmax.f32 %v415_v3, %v984_v28  ;;  %v687_v31 = vrot.slane %v671_v50, 1  ;;  %v685_v16 = vrot.slane %v669_v26, 1 }
  0x92   : > { %v468_v54 = vmax.f32 %v412_v14, %v975_v51  ;;  %v467_v55 = vmax.f32 %v411_v37, %v974_v52  ;;  %v641_v56 = vmax.f32 %v585_v11, %v1204_v0  ;;  %v642_v57 = vmax.f32 %v586_v30, %v1206_v1 }
  0x93   : > { %v504_v60 = vmax.f32 %v472_v12, %v496_v48  ;;  %v503_v8 = vmax.f32 %v471_v21, %v495_v47  ;;  %v688_v1 = vrot.slane %v672_v23, 1 }
  0x94   : > { %v500_v3 = vmax.f32 %v468_v54, %v492_v44  ;;  %v499_v37 = vmax.f32 %v467_v55, %v491_v43  ;;  %v697_v14 = vmax.f32 %v641_v56, %v681_v38  ;;  %v698_v0 = vmax.f32 %v642_v57, %v682_v45  ;;  %v1023_v45 = vpop.permute.xlu2 %1022 }
  0x95   : > { %v535_v24 = vmax.f32 %v503_v8, %v527_v25  ;;  %v536_v35 = vmax.f32 %v504_v60, %v528_v10  ;;  %v1025_v26 = vunpack.i.h.bf16 %v1023_v45  ;;  %v1024_v33 = vunpack.i.l.bf16 %v1023_v45 }
  0x96   : > { %v532_v59 = vmax.f32 %v500_v3, %v524_v20  ;;  %v531_v2 = vmax.f32 %v499_v37, %v523_v53  ;;  %v745_v40 = vmax.f32 %v697_v14, %v1009_v62  ;;  %v746_v48 = vmax.f32 %v698_v0, %v1010_v63  ;;  %v1003_v9 = vpop.permute.xlu1 %1002 }
  0x97   : > { %v1005_v39 = vunpack.i.h.bf16 %v1003_v9  ;;  %v1004_v47 = vunpack.i.l.bf16 %v1003_v9  ;;  %v998_v44 = vpop.permute.xlu0 %997 }
  0x98   : > { %v753_v17 = vpack.c.bf16 %v745_v40, %v745_v40  ;;  %v754_v34 = vpack.c.bf16 %v746_v48, %v746_v48  ;;  %v1000_v43 = vunpack.i.h.bf16 %v998_v44  ;;  %v999_v38 = vunpack.i.l.bf16 %v998_v44 }
  0x99   : > { %v591_v53 = vmax.f32 %v535_v24, %v1004_v47  ;;  %v592_v20 = vmax.f32 %v536_v35, %v1005_v39  ;;  %v587_v50 = vmax.f32 %v531_v2, %v994_v58  ;;  %v588_v23 = vmax.f32 %v532_v59, %v995_v22 }
  0x9a   : > { %v761_v41 = vunpack.c.l.bf16 %v753_v17  ;;  %v762_v25 = vunpack.c.l.bf16 %v754_v34  ;;  %v590_v10 = vmax.f32 %v534_v42, %v1000_v43  ;;  %v589_v49 = vmax.f32 %v1300_v18, %v999_v38 }
  0x9b   : > { %v647_v36 = vmax.f32 %v591_v53, %v1227_v13  ;;  %v648_v19 = vmax.f32 %v592_v20, %v1229_v15  ;;  %v643_v27 = vmax.f32 %v587_v50, %v1216_v6  ;;  %v644_v51 = vmax.f32 %v588_v23, %v1218_v7 }
  0x9c   : > { %770 = vst.msk [vmem:[%s1322_s9] sm:$0xf] %vm769_vm0, %v761_v41  ;;  %v646_v28 = vmax.f32 %v590_v10, %v1213_v5  ;;  %v645_v32 = vmax.f32 %v589_v49, %v1211_v4 }
  0x9d   : > { %771 = vst.msk [vmem:[%s1322_s9 + $0x4] sm:$0xf] %vm769_vm0, %v762_v25  ;;  %v703_v42 = vmax.f32 %v647_v36, %v687_v31  ;;  %v704_v18 = vmax.f32 %v648_v19, %v688_v1  ;;  %v699_v4 = vmax.f32 %v643_v27, %v1302_v29  ;;  %v700_v6 = vmax.f32 %v644_v51, %v1304_v46 }
  0x9e   : > { %v1018_v52 = vpop.permute.xlu1 %1017  ;;  %v701_v13 = vmax.f32 %v645_v32, %v685_v16  ;;  %v702_v11 = vmax.f32 %v646_v28, %v686_v61 }
  0x9f   : > { %v751_v15 = vmax.f32 %v703_v42, %v1024_v33  ;;  %v752_v30 = vmax.f32 %v704_v18, %v1025_v26  ;;  %v1020_v12 = vunpack.i.h.bf16 %v1018_v52  ;;  %v1019_v21 = vunpack.i.l.bf16 %v1018_v52  ;;  %v1013_v63 = vpop.permute.xlu0 %1012 }
  0xa0   : > { %v1015_v62 = vunpack.i.h.bf16 %v1013_v63  ;;  %v1014_v5 = vunpack.i.l.bf16 %v1013_v63 }
  0xa1   : > { %v759_v7 = vpack.c.bf16 %v751_v15, %v751_v15  ;;  %v760_v54 = vpack.c.bf16 %v752_v30, %v752_v30  ;;  %v749_v55 = vmax.f32 %v701_v13, %v1019_v21  ;;  %v750_v56 = vmax.f32 %v702_v11, %v1020_v12 }
  0xa2   : > { %v747_v57 = vmax.f32 %v699_v4, %v1014_v5  ;;  %v748_v22 = vmax.f32 %v700_v6, %v1015_v62 }
  0xa3   : > { %v767_v58 = vunpack.c.l.bf16 %v759_v7  ;;  %v768_v60 = vunpack.c.l.bf16 %v760_v54  ;;  %v757_v8 = vpack.c.bf16 %v749_v55, %v749_v55  ;;  %v758_v3 = vpack.c.bf16 %v750_v56, %v750_v56 }
  0xa4   : > { %v755_v37 = vpack.c.bf16 %v747_v57, %v747_v57  ;;  %v756_v14 = vpack.c.bf16 %v748_v22, %v748_v22 }
  0xa5   : > { %776 = vst.msk [vmem:[%s1322_s9 + $0x18] sm:$0xf] %vm769_vm0, %v767_v58  ;;  %v765_v29 = vunpack.c.l.bf16 %v757_v8  ;;  %v766_v46 = vunpack.c.l.bf16 %v758_v3 }
  0xa6   : > { %777 = vst.msk [vmem:[%s1322_s9 + $0x1c] sm:$0xf] %vm769_vm0, %v768_v60  ;;  %v763_v0 = vunpack.c.l.bf16 %v755_v37  ;;  %v764_v31 = vunpack.c.l.bf16 %v756_v14 }
  0xa7   : > { %774 = vst.msk [vmem:[%s1322_s9 + $0x10] sm:$0xf] %vm769_vm0, %v765_v29 }
  0xa8   : > { %775 = vst.msk [vmem:[%s1322_s9 + $0x14] sm:$0xf] %vm769_vm0, %v766_v46 }
  0xa9   : > { %772 = vst.msk [vmem:[%s1322_s9 + $0x8] sm:$0xf] %vm769_vm0, %v763_v0 }
  0xaa   : > { %773 = vst.msk [vmem:[%s1322_s9 + $0xc] sm:$0xf] %vm769_vm0, %v764_v31 }
  0xab PF: > { %s14_s17 = sadd.s32 1, %s1048_s17   ;;  %s1363_s15 = smov %s1044_s16 }
  0xac   : > { %p11_p5 = scmp.ge.s32.totalorder %s14_s17, 4   ;;  %s1364_s16 = smov %s1366_s18 }
  0xae   :  { %13 = sbr.rel (!%p11_p5) target bundleno = 2 (0x2), region = 75 }

</bundles_post_ra>
